<compile_context>
chip_gen: v7x
topology: tpu7x:2x2x1
jax: 0.10.0
libtpu: 0.0.40
codegen_flags: <defaults>
</compile_context>

<pallas_src>
import math
import jax
import jax.numpy as jnp
from jax.experimental import pallas as pl
from jax.experimental.pallas import tpu as pltpu

D_MODEL = 64
NHEAD = 4
DIM_FF = 64
E = 2 * D_MODEL            # MultiheadAttention embed dim (d_model * 2) = 128
HEAD_DIM = E // NHEAD      # 32
EPS = 1e-5                 # nn.LayerNorm default


def _layer_norm(x, w, b):
    mu = jnp.mean(x, axis=-1, keepdims=True)
    var = jnp.mean((x - mu) ** 2, axis=-1, keepdims=True)
    return (x - mu) * jax.lax.rsqrt(var + EPS) * w + b


def gse_kernel(x_ref, inw_ref, inb_ref, ow_ref, ob_ref,
               ln1w_ref, ln1b_ref, w1_ref, b1_ref, w2_ref, b2_ref,
               ln2w_ref, ln2b_ref, o_ref):
    B, L, D = x_ref.shape
    x = x_ref[...].reshape(B * L, D)            # merge leading dims (L = 8)

    # Fused qkv projection.  Feature duplication (src.repeat) and the
    # 1/sqrt(head_dim) scale are already folded into inw/inb by the wrapper.
    qkv = jnp.einsum('md,fd->mf', x, inw_ref[...],
                     preferred_element_type=jnp.float32) + inb_ref[...]
    qkv = qkv.reshape(B, L, 3 * E)
    q = qkv[..., :E]
    k = qkv[..., E:2 * E]
    v = qkv[..., 2 * E:]

    # Multi-head attention, batched over the B_TILE sequences.  Head concat,
    # output projection and the split(d_model)+sum are folded into ow_ref
    # (shape (NHEAD, D, HEAD_DIM)) and accumulated per head -> no lane concat.
    src2 = None
    for h in range(NHEAD):                      # static unroll, 4 heads
        sl = slice(h * HEAD_DIM, (h + 1) * HEAD_DIM)
        s = jnp.einsum('bqd,bkd->bqk', q[..., sl], k[..., sl],
                       preferred_element_type=jnp.float32)     # (B, L, L)
        s = s - jnp.max(s, axis=-1, keepdims=True)
        p = jnp.exp(s)
        p = p / jnp.sum(p, axis=-1, keepdims=True)
        oh = jnp.einsum('bqk,bkd->bqd', p, v[..., sl],
                        preferred_element_type=jnp.float32)    # (B, L, dh)
        c = jnp.einsum('md,fd->mf', oh.reshape(B * L, HEAD_DIM), ow_ref[h],
                       preferred_element_type=jnp.float32)     # (B*L, D)
        src2 = c if src2 is None else src2 + c
    src2 = src2 + ob_ref[...]

    # residual + norm1   (dropout1 is identity in eval mode)
    x = _layer_norm(x + src2, ln1w_ref[...], ln1b_ref[...])

    # feed-forward: linear2(dropout(relu(linear1(x))))
    hdn = jnp.maximum(
        jnp.einsum('md,fd->mf', x, w1_ref[...],
                   preferred_element_type=jnp.float32) + b1_ref[...], 0.0)
    y = jnp.einsum('mf,df->md', hdn, w2_ref[...],
                   preferred_element_type=jnp.float32) + b2_ref[...]

    # residual + norm2   (dropout2 is identity in eval mode)
    x = _layer_norm(x + y, ln2w_ref[...], ln2b_ref[...])

    o_ref[...] = x.reshape(B, L, D).astype(o_ref.dtype)


def graph_structural_encoder(src, params, b_tile=128):
    """src: (L, N, D_MODEL) float32 -> (L, N, D_MODEL) float32."""
    L, N, D = src.shape
    assert D == D_MODEL

    # ---- one-time weight folding (outside the kernel) --------------------
    in_w = params['in_w']                                      # (3E, E)
    in_wf = in_w[:, :D_MODEL] + in_w[:, D_MODEL:]              # fold repeat(.,2)
    qscale = 1.0 / math.sqrt(HEAD_DIM)
    row_scale = jnp.concatenate([jnp.full((E,), qscale, jnp.float32),
                                 jnp.ones((2 * E,), jnp.float32)])
    in_wf = in_wf * row_scale[:, None]                         # fold q scaling
    in_bf = params['in_b'] * row_scale[None, :]                # (1, 3E)

    out_w = params['out_w']                                    # (E, E)
    ow_fold = out_w[:D_MODEL, :] + out_w[D_MODEL:, :]          # fold split+sum
    ow_f = ow_fold.reshape(D_MODEL, NHEAD, HEAD_DIM).transpose(1, 0, 2)  # (H,D,dh)
    ob_f = params['out_b'][:, :D_MODEL] + params['out_b'][:, D_MODEL:]   # (1, D)

    # ---- batch tiling -----------------------------------------------------
    # NOTE: seq-first -> batch-first transpose stays in the wrapper (one extra
    # HBM pass); in-kernel sublane-axis permutation support is not guaranteed.
    x = jnp.transpose(src, (1, 0, 2))                          # (N, L, D)
    bt = min(b_tile, N)
    n_blocks = (N + bt - 1) // bt
    n_pad = n_blocks * bt
    if n_pad != N:
        x = jnp.pad(x, ((0, n_pad - N), (0, 0), (0, 0)))       # zero-pad batch

    param_list = [
        in_wf, in_bf, ow_f, ob_f,
        params['ln1_w'], params['ln1_b'],
        params['w1'], params['b1'],
        params['w2'], params['b2'],
        params['ln2_w'], params['ln2_b'],
    ]

    in_specs = [pl.BlockSpec((bt, L, D), lambda n: (n, 0, 0))]
    for p in param_list:
        in_specs.append(pl.BlockSpec(p.shape, lambda n, nd=p.ndim: (0,) * nd))

    out = pl.pallas_call(
        gse_kernel,
        out_shape=jax.ShapeDtypeStruct((n_pad, L, D), jnp.float32),
        grid=(n_blocks,),
        in_specs=in_specs,
        out_specs=pl.BlockSpec((bt, L, D), lambda n: (n, 0, 0)),
        compiler_params=pltpu.CompilerParams(
            dimension_semantics=("parallel",)),                # 2 TCs on v7x
    )(x, *param_list)

    return jnp.transpose(out[:N], (1, 0, 2))                   # back to (L,N,D)


def reference(src, params):
    """Plain-JAX replica of the PyTorch forward (eval mode)."""
    L, N, D = src.shape
    x = src
    x1 = jnp.concatenate([x, x], axis=-1)                      # (L, N, E)
    qkv = x1 @ params['in_w'].T + params['in_b'][0]
    q, k, v = jnp.split(qkv, 3, axis=-1)
    qh = q.reshape(L, N, NHEAD, HEAD_DIM) * (1.0 / math.sqrt(HEAD_DIM))
    kh = k.reshape(L, N, NHEAD, HEAD_DIM)
    vh = v.reshape(L, N, NHEAD, HEAD_DIM)
    s = jnp.einsum('lnhd,mnhd->nhlm', qh, kh)
    p_attn = jax.nn.softmax(s, axis=-1)
    o = jnp.einsum('nhlm,mnhd->lnhd', p_attn, vh).reshape(L, N, E)
    attn = o @ params['out_w'].T + params['out_b'][0]
    src2 = attn[..., :D_MODEL] + attn[..., D_MODEL:]
    x = _layer_norm(x + src2, params['ln1_w'][0], params['ln1_b'][0])
    h = jnp.maximum(x @ params['w1'].T + params['b1'][0], 0.0)
    y = h @ params['w2'].T + params['b2'][0]
    x = _layer_norm(x + y, params['ln2_w'][0], params['ln2_b'][0])
    return x


def init_params(key):
    ks = jax.random.split(key, 12)
    s = 0.05
    return {
        # nn.MultiheadAttention(E, NHEAD)
        'in_w':  s * jax.random.normal(ks[0], (3 * E, E), jnp.float32),
        'in_b':  s * jax.random.normal(ks[1], (1, 3 * E), jnp.float32),
        'out_w': s * jax.random.normal(ks[2], (E, E), jnp.float32),
        'out_b': s * jax.random.normal(ks[3], (1, E), jnp.float32),
        # nn.LayerNorm(d_model)
        'ln1_w': 1.0 + s * jax.random.normal(ks[4], (1, D_MODEL), jnp.float32),
        'ln1_b': s * jax.random.normal(ks[5], (1, D_MODEL), jnp.float32),
        # nn.Linear(d_model, dim_feedforward)
        'w1': s * jax.random.normal(ks[6], (DIM_FF, D_MODEL), jnp.float32),
        'b1': s * jax.random.normal(ks[7], (1, DIM_FF), jnp.float32),
        # nn.Linear(dim_feedforward, d_model)
        'w2': s * jax.random.normal(ks[8], (D_MODEL, DIM_FF), jnp.float32),
        'b2': s * jax.random.normal(ks[9], (1, D_MODEL), jnp.float32),
        # nn.LayerNorm(d_model)
        'ln2_w': 1.0 + s * jax.random.normal(ks[10], (1, D_MODEL), jnp.float32),
        'ln2_b': s * jax.random.normal(ks[11], (1, D_MODEL), jnp.float32),
    }


if __name__ == "__main__":
    key = jax.random.PRNGKey(0)
    k_x, k_p = jax.random.split(key)

    L, N = 8, 6                                 # seq-first, like PyTorch MHA
    src = jax.random.normal(k_x, (L, N, D_MODEL), jnp.float32)
    params = init_params(k_p)

    ref = jax.block_until_ready(reference(src, params))

    # single-block path (whole batch in one grid step)
    out = jax.block_until_ready(graph_structural_encoder(src, params))
    assert out.shape == (L, N, D_MODEL)
    assert jnp.allclose(out, ref, atol=1e-4, rtol=1e-4), "mismatch (1 block)"

    # multi-block + padded-batch path
    out2 = jax.block_until_ready(graph_structural_encoder(src, params, b_tile=4))
    assert jnp.allclose(out2, ref, atol=1e-4, rtol=1e-4), "mismatch (2 blocks)"

    print("KERNEL_OK")
</pallas_src>

<mosaic_0001>
module attributes {stable_mosaic.version = 11 : i64} {
  func.func @gse_kernel(%arg0: i32, %arg1: memref<6x8x64xf32, #tpu.memory_space<vmem>>, %arg2: memref<384x64xf32, #tpu.memory_space<vmem>>, %arg3: memref<1x384xf32, #tpu.memory_space<vmem>>, %arg4: memref<4x64x32xf32, #tpu.memory_space<vmem>>, %arg5: memref<1x64xf32, #tpu.memory_space<vmem>>, %arg6: memref<1x64xf32, #tpu.memory_space<vmem>>, %arg7: memref<1x64xf32, #tpu.memory_space<vmem>>, %arg8: memref<64x64xf32, #tpu.memory_space<vmem>>, %arg9: memref<1x64xf32, #tpu.memory_space<vmem>>, %arg10: memref<64x64xf32, #tpu.memory_space<vmem>>, %arg11: memref<1x64xf32, #tpu.memory_space<vmem>>, %arg12: memref<1x64xf32, #tpu.memory_space<vmem>>, %arg13: memref<1x64xf32, #tpu.memory_space<vmem>>, %arg14: memref<6x8x64xf32, #tpu.memory_space<vmem>>) attributes {dimension_semantics = [#tpu.dimension_semantics<parallel>], iteration_bounds = array<i64: 1>, scalar_prefetch = 0 : i64, scratch_operands = 0 : i64, tpu.core_type = #tpu.core_type<tc>, window_params = [{transform_indices = @transform_0, window_bounds = array<i64: 6, 8, 64>}, {pipeline_mode = #tpu.pipeline_mode<synchronous>, transform_indices = @transform_1, window_bounds = array<i64: 384, 64>}, {pipeline_mode = #tpu.pipeline_mode<synchronous>, transform_indices = @transform_2, window_bounds = array<i64: 1, 384>}, {pipeline_mode = #tpu.pipeline_mode<synchronous>, transform_indices = @transform_3, window_bounds = array<i64: 4, 64, 32>}, {pipeline_mode = #tpu.pipeline_mode<synchronous>, transform_indices = @transform_4, window_bounds = array<i64: 1, 64>}, {pipeline_mode = #tpu.pipeline_mode<synchronous>, transform_indices = @transform_5, window_bounds = array<i64: 1, 64>}, {pipeline_mode = #tpu.pipeline_mode<synchronous>, transform_indices = @transform_6, window_bounds = array<i64: 1, 64>}, {pipeline_mode = #tpu.pipeline_mode<synchronous>, transform_indices = @transform_7, window_bounds = array<i64: 64, 64>}, {pipeline_mode = #tpu.pipeline_mode<synchronous>, transform_indices = @transform_8, window_bounds = array<i64: 1, 64>}, {pipeline_mode = #tpu.pipeline_mode<synchronous>, transform_indices = @transform_9, window_bounds = array<i64: 64, 64>}, {pipeline_mode = #tpu.pipeline_mode<synchronous>, transform_indices = @transform_10, window_bounds = array<i64: 1, 64>}, {pipeline_mode = #tpu.pipeline_mode<synchronous>, transform_indices = @transform_11, window_bounds = array<i64: 1, 64>}, {pipeline_mode = #tpu.pipeline_mode<synchronous>, transform_indices = @transform_12, window_bounds = array<i64: 1, 64>}, {transform_indices = @transform_13, window_bounds = array<i64: 6, 8, 64>}]} {
    %c0 = arith.constant 0 : index
    %c0_0 = arith.constant 0 : index
    %c0_1 = arith.constant 0 : index
    %0 = vector.load %arg1[%c0, %c0_0, %c0_1] : memref<6x8x64xf32, #tpu.memory_space<vmem>>, vector<6x8x64xf32>
    %1 = vector.shape_cast %0 : vector<6x8x64xf32> to vector<48x64xf32>
    %c0_2 = arith.constant 0 : index
    %c0_3 = arith.constant 0 : index
    %2 = vector.load %arg2[%c0_2, %c0_3] : memref<384x64xf32, #tpu.memory_space<vmem>>, vector<384x64xf32>
    "tpu.trace_start"() <{level = 10 : i32, message = "md,fd->mf"}> : () -> ()
    %cst = arith.constant dense<0.000000e+00> : vector<48x384xf32>
    %3 = tpu.matmul %1, %2, %cst {dimension_numbers = #tpu.dot_dimension_numbers<[1], [1], [0], [0], [0, 0, 1, 0], [], []>} : vector<48x64xf32>, vector<384x64xf32>, vector<48x384xf32> -> vector<48x384xf32>
    "tpu.trace_stop"() : () -> ()
    %c0_4 = arith.constant 0 : index
    %c0_5 = arith.constant 0 : index
    %4 = vector.load %arg3[%c0_4, %c0_5] : memref<1x384xf32, #tpu.memory_space<vmem>>, vector<1x384xf32>
    %5 = vector.broadcast %4 : vector<1x384xf32> to vector<48x384xf32>
    %6 = arith.addf %3, %5 : vector<48x384xf32>
    %7 = vector.shape_cast %6 : vector<48x384xf32> to vector<6x8x384xf32>
    %8 = vector.extract_strided_slice %7 {offsets = [0, 0, 0], sizes = [6, 8, 128], strides = [1, 1, 1]} : vector<6x8x384xf32> to vector<6x8x128xf32>
    %9 = vector.extract_strided_slice %7 {offsets = [0, 0, 128], sizes = [6, 8, 128], strides = [1, 1, 1]} : vector<6x8x384xf32> to vector<6x8x128xf32>
    %10 = vector.extract_strided_slice %7 {offsets = [0, 0, 256], sizes = [6, 8, 128], strides = [1, 1, 1]} : vector<6x8x384xf32> to vector<6x8x128xf32>
    %11 = vector.extract_strided_slice %8 {offsets = [0, 0, 0], sizes = [6, 8, 32], strides = [1, 1, 1]} : vector<6x8x128xf32> to vector<6x8x32xf32>
    %12 = vector.extract_strided_slice %9 {offsets = [0, 0, 0], sizes = [6, 8, 32], strides = [1, 1, 1]} : vector<6x8x128xf32> to vector<6x8x32xf32>
    "tpu.trace_start"() <{level = 10 : i32, message = "bqd,bkd->bqk"}> : () -> ()
    %cst_6 = arith.constant dense<0.000000e+00> : vector<6x8x8xf32>
    %13 = tpu.matmul %11, %12, %cst_6 {dimension_numbers = #tpu.dot_dimension_numbers<[2], [2], [1], [1], [0, 0, 0, 1, 1, 1], [0], [0]>} : vector<6x8x32xf32>, vector<6x8x32xf32>, vector<6x8x8xf32> -> vector<6x8x8xf32>
    "tpu.trace_stop"() : () -> ()
    %cst_7 = arith.constant dense<0xFF800000> : vector<6x8xf32>
    %14 = vector.multi_reduction <maximumf>, %13, %cst_7 [2] : vector<6x8x8xf32> to vector<6x8xf32>
    %15 = vector.shape_cast %14 : vector<6x8xf32> to vector<6x8x1xf32>
    %16 = vector.broadcast %15 : vector<6x8x1xf32> to vector<6x8x8xf32>
    %17 = arith.subf %13, %16 : vector<6x8x8xf32>
    %18 = math.exp %17 : vector<6x8x8xf32>
    %cst_8 = arith.constant dense<0.000000e+00> : vector<6x8xf32>
    %19 = vector.multi_reduction <add>, %18, %cst_8 [2] : vector<6x8x8xf32> to vector<6x8xf32>
    %20 = vector.shape_cast %19 : vector<6x8xf32> to vector<6x8x1xf32>
    %21 = vector.broadcast %20 : vector<6x8x1xf32> to vector<6x8x8xf32>
    %22 = arith.divf %18, %21 : vector<6x8x8xf32>
    %23 = vector.extract_strided_slice %10 {offsets = [0, 0, 0], sizes = [6, 8, 32], strides = [1, 1, 1]} : vector<6x8x128xf32> to vector<6x8x32xf32>
    "tpu.trace_start"() <{level = 10 : i32, message = "bqk,bkd->bqd"}> : () -> ()
    %cst_9 = arith.constant dense<0.000000e+00> : vector<6x8x32xf32>
    %24 = tpu.matmul %22, %23, %cst_9 {dimension_numbers = #tpu.dot_dimension_numbers<[2], [1], [1], [2], [0, 0, 0, 1, 1, 2], [0], [0]>} : vector<6x8x8xf32>, vector<6x8x32xf32>, vector<6x8x32xf32> -> vector<6x8x32xf32>
    "tpu.trace_stop"() : () -> ()
    %25 = vector.shape_cast %24 : vector<6x8x32xf32> to vector<48x32xf32>
    %c0_10 = arith.constant 0 : index
    %c0_11 = arith.constant 0 : index
    %c0_12 = arith.constant 0 : index
    %26 = vector.load %arg4[%c0_10, %c0_11, %c0_12] : memref<4x64x32xf32, #tpu.memory_space<vmem>>, vector<1x64x32xf32>
    %27 = vector.shape_cast %26 : vector<1x64x32xf32> to vector<64x32xf32>
    "tpu.trace_start"() <{level = 10 : i32, message = "md,fd->mf"}> : () -> ()
    %cst_13 = arith.constant dense<0.000000e+00> : vector<48x64xf32>
    %28 = tpu.matmul %25, %27, %cst_13 {dimension_numbers = #tpu.dot_dimension_numbers<[1], [1], [0], [0], [0, 0, 1, 0], [], []>} : vector<48x32xf32>, vector<64x32xf32>, vector<48x64xf32> -> vector<48x64xf32>
    "tpu.trace_stop"() : () -> ()
    %29 = vector.extract_strided_slice %8 {offsets = [0, 0, 32], sizes = [6, 8, 32], strides = [1, 1, 1]} : vector<6x8x128xf32> to vector<6x8x32xf32>
    %30 = vector.extract_strided_slice %9 {offsets = [0, 0, 32], sizes = [6, 8, 32], strides = [1, 1, 1]} : vector<6x8x128xf32> to vector<6x8x32xf32>
    "tpu.trace_start"() <{level = 10 : i32, message = "bqd,bkd->bqk"}> : () -> ()
    %cst_14 = arith.constant dense<0.000000e+00> : vector<6x8x8xf32>
    %31 = tpu.matmul %29, %30, %cst_14 {dimension_numbers = #tpu.dot_dimension_numbers<[2], [2], [1], [1], [0, 0, 0, 1, 1, 1], [0], [0]>} : vector<6x8x32xf32>, vector<6x8x32xf32>, vector<6x8x8xf32> -> vector<6x8x8xf32>
    "tpu.trace_stop"() : () -> ()
    %cst_15 = arith.constant dense<0xFF800000> : vector<6x8xf32>
    %32 = vector.multi_reduction <maximumf>, %31, %cst_15 [2] : vector<6x8x8xf32> to vector<6x8xf32>
    %33 = vector.shape_cast %32 : vector<6x8xf32> to vector<6x8x1xf32>
    %34 = vector.broadcast %33 : vector<6x8x1xf32> to vector<6x8x8xf32>
    %35 = arith.subf %31, %34 : vector<6x8x8xf32>
    %36 = math.exp %35 : vector<6x8x8xf32>
    %cst_16 = arith.constant dense<0.000000e+00> : vector<6x8xf32>
    %37 = vector.multi_reduction <add>, %36, %cst_16 [2] : vector<6x8x8xf32> to vector<6x8xf32>
    %38 = vector.shape_cast %37 : vector<6x8xf32> to vector<6x8x1xf32>
    %39 = vector.broadcast %38 : vector<6x8x1xf32> to vector<6x8x8xf32>
    %40 = arith.divf %36, %39 : vector<6x8x8xf32>
    %41 = vector.extract_strided_slice %10 {offsets = [0, 0, 32], sizes = [6, 8, 32], strides = [1, 1, 1]} : vector<6x8x128xf32> to vector<6x8x32xf32>
    "tpu.trace_start"() <{level = 10 : i32, message = "bqk,bkd->bqd"}> : () -> ()
    %cst_17 = arith.constant dense<0.000000e+00> : vector<6x8x32xf32>
    %42 = tpu.matmul %40, %41, %cst_17 {dimension_numbers = #tpu.dot_dimension_numbers<[2], [1], [1], [2], [0, 0, 0, 1, 1, 2], [0], [0]>} : vector<6x8x8xf32>, vector<6x8x32xf32>, vector<6x8x32xf32> -> vector<6x8x32xf32>
    "tpu.trace_stop"() : () -> ()
    %43 = vector.shape_cast %42 : vector<6x8x32xf32> to vector<48x32xf32>
    %c1 = arith.constant 1 : index
    %c0_18 = arith.constant 0 : index
    %c0_19 = arith.constant 0 : index
    %44 = vector.load %arg4[%c1, %c0_18, %c0_19] : memref<4x64x32xf32, #tpu.memory_space<vmem>>, vector<1x64x32xf32>
    %45 = vector.shape_cast %44 : vector<1x64x32xf32> to vector<64x32xf32>
    "tpu.trace_start"() <{level = 10 : i32, message = "md,fd->mf"}> : () -> ()
    %cst_20 = arith.constant dense<0.000000e+00> : vector<48x64xf32>
    %46 = tpu.matmul %43, %45, %cst_20 {dimension_numbers = #tpu.dot_dimension_numbers<[1], [1], [0], [0], [0, 0, 1, 0], [], []>} : vector<48x32xf32>, vector<64x32xf32>, vector<48x64xf32> -> vector<48x64xf32>
    "tpu.trace_stop"() : () -> ()
    %47 = arith.addf %28, %46 : vector<48x64xf32>
    %48 = vector.extract_strided_slice %8 {offsets = [0, 0, 64], sizes = [6, 8, 32], strides = [1, 1, 1]} : vector<6x8x128xf32> to vector<6x8x32xf32>
    %49 = vector.extract_strided_slice %9 {offsets = [0, 0, 64], sizes = [6, 8, 32], strides = [1, 1, 1]} : vector<6x8x128xf32> to vector<6x8x32xf32>
    "tpu.trace_start"() <{level = 10 : i32, message = "bqd,bkd->bqk"}> : () -> ()
    %cst_21 = arith.constant dense<0.000000e+00> : vector<6x8x8xf32>
    %50 = tpu.matmul %48, %49, %cst_21 {dimension_numbers = #tpu.dot_dimension_numbers<[2], [2], [1], [1], [0, 0, 0, 1, 1, 1], [0], [0]>} : vector<6x8x32xf32>, vector<6x8x32xf32>, vector<6x8x8xf32> -> vector<6x8x8xf32>
    "tpu.trace_stop"() : () -> ()
    %cst_22 = arith.constant dense<0xFF800000> : vector<6x8xf32>
    %51 = vector.multi_reduction <maximumf>, %50, %cst_22 [2] : vector<6x8x8xf32> to vector<6x8xf32>
    %52 = vector.shape_cast %51 : vector<6x8xf32> to vector<6x8x1xf32>
    %53 = vector.broadcast %52 : vector<6x8x1xf32> to vector<6x8x8xf32>
    %54 = arith.subf %50, %53 : vector<6x8x8xf32>
    %55 = math.exp %54 : vector<6x8x8xf32>
    %cst_23 = arith.constant dense<0.000000e+00> : vector<6x8xf32>
    %56 = vector.multi_reduction <add>, %55, %cst_23 [2] : vector<6x8x8xf32> to vector<6x8xf32>
    %57 = vector.shape_cast %56 : vector<6x8xf32> to vector<6x8x1xf32>
    %58 = vector.broadcast %57 : vector<6x8x1xf32> to vector<6x8x8xf32>
    %59 = arith.divf %55, %58 : vector<6x8x8xf32>
    %60 = vector.extract_strided_slice %10 {offsets = [0, 0, 64], sizes = [6, 8, 32], strides = [1, 1, 1]} : vector<6x8x128xf32> to vector<6x8x32xf32>
    "tpu.trace_start"() <{level = 10 : i32, message = "bqk,bkd->bqd"}> : () -> ()
    %cst_24 = arith.constant dense<0.000000e+00> : vector<6x8x32xf32>
    %61 = tpu.matmul %59, %60, %cst_24 {dimension_numbers = #tpu.dot_dimension_numbers<[2], [1], [1], [2], [0, 0, 0, 1, 1, 2], [0], [0]>} : vector<6x8x8xf32>, vector<6x8x32xf32>, vector<6x8x32xf32> -> vector<6x8x32xf32>
    "tpu.trace_stop"() : () -> ()
    %62 = vector.shape_cast %61 : vector<6x8x32xf32> to vector<48x32xf32>
    %c2 = arith.constant 2 : index
    %c0_25 = arith.constant 0 : index
    %c0_26 = arith.constant 0 : index
    %63 = vector.load %arg4[%c2, %c0_25, %c0_26] : memref<4x64x32xf32, #tpu.memory_space<vmem>>, vector<1x64x32xf32>
    %64 = vector.shape_cast %63 : vector<1x64x32xf32> to vector<64x32xf32>
    "tpu.trace_start"() <{level = 10 : i32, message = "md,fd->mf"}> : () -> ()
    %cst_27 = arith.constant dense<0.000000e+00> : vector<48x64xf32>
    %65 = tpu.matmul %62, %64, %cst_27 {dimension_numbers = #tpu.dot_dimension_numbers<[1], [1], [0], [0], [0, 0, 1, 0], [], []>} : vector<48x32xf32>, vector<64x32xf32>, vector<48x64xf32> -> vector<48x64xf32>
    "tpu.trace_stop"() : () -> ()
    %66 = arith.addf %47, %65 : vector<48x64xf32>
    %67 = vector.extract_strided_slice %8 {offsets = [0, 0, 96], sizes = [6, 8, 32], strides = [1, 1, 1]} : vector<6x8x128xf32> to vector<6x8x32xf32>
    %68 = vector.extract_strided_slice %9 {offsets = [0, 0, 96], sizes = [6, 8, 32], strides = [1, 1, 1]} : vector<6x8x128xf32> to vector<6x8x32xf32>
    "tpu.trace_start"() <{level = 10 : i32, message = "bqd,bkd->bqk"}> : () -> ()
    %cst_28 = arith.constant dense<0.000000e+00> : vector<6x8x8xf32>
    %69 = tpu.matmul %67, %68, %cst_28 {dimension_numbers = #tpu.dot_dimension_numbers<[2], [2], [1], [1], [0, 0, 0, 1, 1, 1], [0], [0]>} : vector<6x8x32xf32>, vector<6x8x32xf32>, vector<6x8x8xf32> -> vector<6x8x8xf32>
    "tpu.trace_stop"() : () -> ()
    %cst_29 = arith.constant dense<0xFF800000> : vector<6x8xf32>
    %70 = vector.multi_reduction <maximumf>, %69, %cst_29 [2] : vector<6x8x8xf32> to vector<6x8xf32>
    %71 = vector.shape_cast %70 : vector<6x8xf32> to vector<6x8x1xf32>
    %72 = vector.broadcast %71 : vector<6x8x1xf32> to vector<6x8x8xf32>
    %73 = arith.subf %69, %72 : vector<6x8x8xf32>
    %74 = math.exp %73 : vector<6x8x8xf32>
    %cst_30 = arith.constant dense<0.000000e+00> : vector<6x8xf32>
    %75 = vector.multi_reduction <add>, %74, %cst_30 [2] : vector<6x8x8xf32> to vector<6x8xf32>
    %76 = vector.shape_cast %75 : vector<6x8xf32> to vector<6x8x1xf32>
    %77 = vector.broadcast %76 : vector<6x8x1xf32> to vector<6x8x8xf32>
    %78 = arith.divf %74, %77 : vector<6x8x8xf32>
    %79 = vector.extract_strided_slice %10 {offsets = [0, 0, 96], sizes = [6, 8, 32], strides = [1, 1, 1]} : vector<6x8x128xf32> to vector<6x8x32xf32>
    "tpu.trace_start"() <{level = 10 : i32, message = "bqk,bkd->bqd"}> : () -> ()
    %cst_31 = arith.constant dense<0.000000e+00> : vector<6x8x32xf32>
    %80 = tpu.matmul %78, %79, %cst_31 {dimension_numbers = #tpu.dot_dimension_numbers<[2], [1], [1], [2], [0, 0, 0, 1, 1, 2], [0], [0]>} : vector<6x8x8xf32>, vector<6x8x32xf32>, vector<6x8x32xf32> -> vector<6x8x32xf32>
    "tpu.trace_stop"() : () -> ()
    %81 = vector.shape_cast %80 : vector<6x8x32xf32> to vector<48x32xf32>
    %c3 = arith.constant 3 : index
    %c0_32 = arith.constant 0 : index
    %c0_33 = arith.constant 0 : index
    %82 = vector.load %arg4[%c3, %c0_32, %c0_33] : memref<4x64x32xf32, #tpu.memory_space<vmem>>, vector<1x64x32xf32>
    %83 = vector.shape_cast %82 : vector<1x64x32xf32> to vector<64x32xf32>
    "tpu.trace_start"() <{level = 10 : i32, message = "md,fd->mf"}> : () -> ()
    %cst_34 = arith.constant dense<0.000000e+00> : vector<48x64xf32>
    %84 = tpu.matmul %81, %83, %cst_34 {dimension_numbers = #tpu.dot_dimension_numbers<[1], [1], [0], [0], [0, 0, 1, 0], [], []>} : vector<48x32xf32>, vector<64x32xf32>, vector<48x64xf32> -> vector<48x64xf32>
    "tpu.trace_stop"() : () -> ()
    %85 = arith.addf %66, %84 : vector<48x64xf32>
    %c0_35 = arith.constant 0 : index
    %c0_36 = arith.constant 0 : index
    %86 = vector.load %arg5[%c0_35, %c0_36] : memref<1x64xf32, #tpu.memory_space<vmem>>, vector<1x64xf32>
    %87 = vector.broadcast %86 : vector<1x64xf32> to vector<48x64xf32>
    %88 = arith.addf %85, %87 : vector<48x64xf32>
    %89 = arith.addf %1, %88 : vector<48x64xf32>
    %c0_37 = arith.constant 0 : index
    %c0_38 = arith.constant 0 : index
    %90 = vector.load %arg6[%c0_37, %c0_38] : memref<1x64xf32, #tpu.memory_space<vmem>>, vector<1x64xf32>
    %c0_39 = arith.constant 0 : index
    %c0_40 = arith.constant 0 : index
    %91 = vector.load %arg7[%c0_39, %c0_40] : memref<1x64xf32, #tpu.memory_space<vmem>>, vector<1x64xf32>
    %cst_41 = arith.constant dense<0.000000e+00> : vector<48xf32>
    %92 = vector.multi_reduction <add>, %89, %cst_41 [1] : vector<48x64xf32> to vector<48xf32>
    %93 = vector.shape_cast %92 : vector<48xf32> to vector<48x1xf32>
    %cst_42 = arith.constant 6.400000e+01 : f32
    %94 = vector.broadcast %cst_42 : f32 to vector<48x1xf32>
    %95 = arith.divf %93, %94 : vector<48x1xf32>
    %96 = vector.broadcast %95 : vector<48x1xf32> to vector<48x64xf32>
    %97 = arith.subf %89, %96 : vector<48x64xf32>
    %98 = arith.mulf %97, %97 : vector<48x64xf32>
    %cst_43 = arith.constant dense<0.000000e+00> : vector<48xf32>
    %99 = vector.multi_reduction <add>, %98, %cst_43 [1] : vector<48x64xf32> to vector<48xf32>
    %100 = vector.shape_cast %99 : vector<48xf32> to vector<48x1xf32>
    %cst_44 = arith.constant 6.400000e+01 : f32
    %101 = vector.broadcast %cst_44 : f32 to vector<48x1xf32>
    %102 = arith.divf %100, %101 : vector<48x1xf32>
    %103 = vector.broadcast %95 : vector<48x1xf32> to vector<48x64xf32>
    %104 = arith.subf %89, %103 : vector<48x64xf32>
    %cst_45 = arith.constant 9.99999974E-6 : f32
    %105 = vector.broadcast %cst_45 : f32 to vector<48x1xf32>
    %106 = arith.addf %102, %105 : vector<48x1xf32>
    %107 = math.rsqrt %106 : vector<48x1xf32>
    %108 = vector.broadcast %107 : vector<48x1xf32> to vector<48x64xf32>
    %109 = arith.mulf %104, %108 : vector<48x64xf32>
    %110 = vector.broadcast %90 : vector<1x64xf32> to vector<48x64xf32>
    %111 = arith.mulf %109, %110 : vector<48x64xf32>
    %112 = vector.broadcast %91 : vector<1x64xf32> to vector<48x64xf32>
    %113 = arith.addf %111, %112 : vector<48x64xf32>
    %c0_46 = arith.constant 0 : index
    %c0_47 = arith.constant 0 : index
    %114 = vector.load %arg8[%c0_46, %c0_47] : memref<64x64xf32, #tpu.memory_space<vmem>>, vector<64x64xf32>
    "tpu.trace_start"() <{level = 10 : i32, message = "md,fd->mf"}> : () -> ()
    %cst_48 = arith.constant dense<0.000000e+00> : vector<48x64xf32>
    %115 = tpu.matmul %113, %114, %cst_48 {dimension_numbers = #tpu.dot_dimension_numbers<[1], [1], [0], [0], [0, 0, 1, 0], [], []>} : vector<48x64xf32>, vector<64x64xf32>, vector<48x64xf32> -> vector<48x64xf32>
    "tpu.trace_stop"() : () -> ()
    %c0_49 = arith.constant 0 : index
    %c0_50 = arith.constant 0 : index
    %116 = vector.load %arg9[%c0_49, %c0_50] : memref<1x64xf32, #tpu.memory_space<vmem>>, vector<1x64xf32>
    %117 = vector.broadcast %116 : vector<1x64xf32> to vector<48x64xf32>
    %118 = arith.addf %115, %117 : vector<48x64xf32>
    %cst_51 = arith.constant 0.000000e+00 : f32
    %119 = vector.broadcast %cst_51 : f32 to vector<48x64xf32>
    %120 = arith.maximumf %118, %119 : vector<48x64xf32>
    %c0_52 = arith.constant 0 : index
    %c0_53 = arith.constant 0 : index
    %121 = vector.load %arg10[%c0_52, %c0_53] : memref<64x64xf32, #tpu.memory_space<vmem>>, vector<64x64xf32>
    "tpu.trace_start"() <{level = 10 : i32, message = "mf,df->md"}> : () -> ()
    %cst_54 = arith.constant dense<0.000000e+00> : vector<48x64xf32>
    %122 = tpu.matmul %120, %121, %cst_54 {dimension_numbers = #tpu.dot_dimension_numbers<[1], [1], [0], [0], [0, 0, 1, 0], [], []>} : vector<48x64xf32>, vector<64x64xf32>, vector<48x64xf32> -> vector<48x64xf32>
    "tpu.trace_stop"() : () -> ()
    %c0_55 = arith.constant 0 : index
    %c0_56 = arith.constant 0 : index
    %123 = vector.load %arg11[%c0_55, %c0_56] : memref<1x64xf32, #tpu.memory_space<vmem>>, vector<1x64xf32>
    %124 = vector.broadcast %123 : vector<1x64xf32> to vector<48x64xf32>
    %125 = arith.addf %122, %124 : vector<48x64xf32>
    %126 = arith.addf %113, %125 : vector<48x64xf32>
    %c0_57 = arith.constant 0 : index
    %c0_58 = arith.constant 0 : index
    %127 = vector.load %arg12[%c0_57, %c0_58] : memref<1x64xf32, #tpu.memory_space<vmem>>, vector<1x64xf32>
    %c0_59 = arith.constant 0 : index
    %c0_60 = arith.constant 0 : index
    %128 = vector.load %arg13[%c0_59, %c0_60] : memref<1x64xf32, #tpu.memory_space<vmem>>, vector<1x64xf32>
    %cst_61 = arith.constant dense<0.000000e+00> : vector<48xf32>
    %129 = vector.multi_reduction <add>, %126, %cst_61 [1] : vector<48x64xf32> to vector<48xf32>
    %130 = vector.shape_cast %129 : vector<48xf32> to vector<48x1xf32>
    %cst_62 = arith.constant 6.400000e+01 : f32
    %131 = vector.broadcast %cst_62 : f32 to vector<48x1xf32>
    %132 = arith.divf %130, %131 : vector<48x1xf32>
    %133 = vector.broadcast %132 : vector<48x1xf32> to vector<48x64xf32>
    %134 = arith.subf %126, %133 : vector<48x64xf32>
    %135 = arith.mulf %134, %134 : vector<48x64xf32>
    %cst_63 = arith.constant dense<0.000000e+00> : vector<48xf32>
    %136 = vector.multi_reduction <add>, %135, %cst_63 [1] : vector<48x64xf32> to vector<48xf32>
    %137 = vector.shape_cast %136 : vector<48xf32> to vector<48x1xf32>
    %cst_64 = arith.constant 6.400000e+01 : f32
    %138 = vector.broadcast %cst_64 : f32 to vector<48x1xf32>
    %139 = arith.divf %137, %138 : vector<48x1xf32>
    %140 = vector.broadcast %132 : vector<48x1xf32> to vector<48x64xf32>
    %141 = arith.subf %126, %140 : vector<48x64xf32>
    %cst_65 = arith.constant 9.99999974E-6 : f32
    %142 = vector.broadcast %cst_65 : f32 to vector<48x1xf32>
    %143 = arith.addf %139, %142 : vector<48x1xf32>
    %144 = math.rsqrt %143 : vector<48x1xf32>
    %145 = vector.broadcast %144 : vector<48x1xf32> to vector<48x64xf32>
    %146 = arith.mulf %141, %145 : vector<48x64xf32>
    %147 = vector.broadcast %127 : vector<1x64xf32> to vector<48x64xf32>
    %148 = arith.mulf %146, %147 : vector<48x64xf32>
    %149 = vector.broadcast %128 : vector<1x64xf32> to vector<48x64xf32>
    %150 = arith.addf %148, %149 : vector<48x64xf32>
    %151 = vector.shape_cast %150 : vector<48x64xf32> to vector<6x8x64xf32>
    %c0_66 = arith.constant 0 : index
    %c0_67 = arith.constant 0 : index
    %c0_68 = arith.constant 0 : index
    %152 = vector.load %arg14[%c0_66, %c0_67, %c0_68] : memref<6x8x64xf32, #tpu.memory_space<vmem>>, vector<6x8x64xf32>
    tpu.vector_store %arg14[%c0_66, %c0_67, %c0_68], %151 {strides = array<i32>} : memref<6x8x64xf32, #tpu.memory_space<vmem>>, vector<6x8x64xf32>,
    return
  }
  func.func @transform_0(%arg0: i32) -> (i32, i32, i32) {
    %c0_i32 = arith.constant 0 : i32
    %c0_i32_0 = arith.constant 0 : i32
    %c0_i32_1 = arith.constant 0 : i32
    return %arg0, %c0_i32, %c0_i32_0 : i32, i32, i32
  }
  func.func @transform_1(%arg0: i32) -> (i32, i32) {
    %c0_i32 = arith.constant 0 : i32
    %c0_i32_0 = arith.constant 0 : i32
    %c0_i32_1 = arith.constant 0 : i32
    return %c0_i32, %c0_i32_0 : i32, i32
  }
  func.func @transform_2(%arg0: i32) -> (i32, i32) {
    %c0_i32 = arith.constant 0 : i32
    %c0_i32_0 = arith.constant 0 : i32
    %c0_i32_1 = arith.constant 0 : i32
    return %c0_i32, %c0_i32_0 : i32, i32
  }
  func.func @transform_3(%arg0: i32) -> (i32, i32, i32) {
    %c0_i32 = arith.constant 0 : i32
    %c0_i32_0 = arith.constant 0 : i32
    %c0_i32_1 = arith.constant 0 : i32
    %c0_i32_2 = arith.constant 0 : i32
    return %c0_i32, %c0_i32_0, %c0_i32_1 : i32, i32, i32
  }
  func.func @transform_4(%arg0: i32) -> (i32, i32) {
    %c0_i32 = arith.constant 0 : i32
    %c0_i32_0 = arith.constant 0 : i32
    %c0_i32_1 = arith.constant 0 : i32
    return %c0_i32, %c0_i32_0 : i32, i32
  }
  func.func @transform_5(%arg0: i32) -> (i32, i32) {
    %c0_i32 = arith.constant 0 : i32
    %c0_i32_0 = arith.constant 0 : i32
    %c0_i32_1 = arith.constant 0 : i32
    return %c0_i32, %c0_i32_0 : i32, i32
  }
  func.func @transform_6(%arg0: i32) -> (i32, i32) {
    %c0_i32 = arith.constant 0 : i32
    %c0_i32_0 = arith.constant 0 : i32
    %c0_i32_1 = arith.constant 0 : i32
    return %c0_i32, %c0_i32_0 : i32, i32
  }
  func.func @transform_7(%arg0: i32) -> (i32, i32) {
    %c0_i32 = arith.constant 0 : i32
    %c0_i32_0 = arith.constant 0 : i32
    %c0_i32_1 = arith.constant 0 : i32
    return %c0_i32, %c0_i32_0 : i32, i32
  }
  func.func @transform_8(%arg0: i32) -> (i32, i32) {
    %c0_i32 = arith.constant 0 : i32
    %c0_i32_0 = arith.constant 0 : i32
    %c0_i32_1 = arith.constant 0 : i32
    return %c0_i32, %c0_i32_0 : i32, i32
  }
  func.func @transform_9(%arg0: i32) -> (i32, i32) {
    %c0_i32 = arith.constant 0 : i32
    %c0_i32_0 = arith.constant 0 : i32
    %c0_i32_1 = arith.constant 0 : i32
    return %c0_i32, %c0_i32_0 : i32, i32
  }
  func.func @transform_10(%arg0: i32) -> (i32, i32) {
    %c0_i32 = arith.constant 0 : i32
    %c0_i32_0 = arith.constant 0 : i32
    %c0_i32_1 = arith.constant 0 : i32
    return %c0_i32, %c0_i32_0 : i32, i32
  }
  func.func @transform_11(%arg0: i32) -> (i32, i32) {
    %c0_i32 = arith.constant 0 : i32
    %c0_i32_0 = arith.constant 0 : i32
    %c0_i32_1 = arith.constant 0 : i32
    return %c0_i32, %c0_i32_0 : i32, i32
  }
  func.func @transform_12(%arg0: i32) -> (i32, i32) {
    %c0_i32 = arith.constant 0 : i32
    %c0_i32_0 = arith.constant 0 : i32
    %c0_i32_1 = arith.constant 0 : i32
    return %c0_i32, %c0_i32_0 : i32, i32
  }
  func.func @transform_13(%arg0: i32) -> (i32, i32, i32) {
    %c0_i32 = arith.constant 0 : i32
    %c0_i32_0 = arith.constant 0 : i32
    %c0_i32_1 = arith.constant 0 : i32
    return %arg0, %c0_i32, %c0_i32_0 : i32, i32, i32
  }
}

</mosaic_0001>

<bundles_post_ra>
// kernel: tpu_custom_call.1
= control target key start
LH: loop header
LB: loop body
LE: loop exit
PB: predicated region body
PF: predicated region fallthrough
CT: control target
= control target key end

     0   :  { %vm116_vm0 = vcmask 523264   ;;  %s8224_s0 = inlined_call_operand.vmem [shape: f32[6,8,64], index: 0, kind: input, shape index: {}]   ;;  %s8225_s1 = inlined_call_operand.vmem [shape: f32[384,64], index: 1, kind: input, shape index: {}]   ;;  %s8226_s2 = inlined_call_operand.vmem [shape: f32[1,384], index: 2, kind: input, shape index: {}]   ;;  %s8227_s3 = inlined_call_operand.vmem [shape: f32[4,64,32], index: 3, kind: input, shape index: {}]   ;;  %s8228_s4 = inlined_call_operand.vmem [shape: f32[1,64], index: 4, kind: input, shape index: {}]   ;;  %s8229_s5 = inlined_call_operand.vmem [shape: f32[1,64], index: 5, kind: input, shape index: {}]   ;;  %s8230_s6 = inlined_call_operand.vmem [shape: f32[1,64], index: 6, kind: input, shape index: {}]   ;;  %s8231_s7 = inlined_call_operand.vmem [shape: f32[64,64], index: 7, kind: input, shape index: {}]   ;;  %s8232_s8 = inlined_call_operand.vmem [shape: f32[1,64], index: 8, kind: input, shape index: {}]   ;;  %s8233_s9 = inlined_call_operand.vmem [shape: f32[64,64], index: 9, kind: input, shape index: {}]   ;;  %s8234_s10 = inlined_call_operand.vmem [shape: f32[1,64], index: 10, kind: input, shape index: {}]   ;;  %s8235_s11 = inlined_call_operand.vmem [shape: f32[1,64], index: 11, kind: input, shape index: {}]   ;;  %s8236_s12 = inlined_call_operand.vmem [shape: f32[1,64], index: 12, kind: input, shape index: {}]   ;;  %s8237_s13 = inlined_call_operand.hbm [shape: f32[6,8,64], index: 13, kind: output, shape index: {}]  }
   0x1   :  { %v67_v0 = vld [vmem:[%s8225_s1 + $0x80] sm:$0xff]  ;;  %v68_v1 = vld [vmem:[%s8225_s1 + $0x88] sm:$0xff]  ;;  %vm7003_vm1 = vmpackc.low %vm116_vm0, %vm116_vm0 }
   0x2   :  { %v51_v2 = vld [vmem:[%s8225_s1] sm:$0xff]  ;;  %v6498_v3 = vpack.c.bf16 %v68_v1, %v67_v0  ;;  %v52_v5 = vld [vmem:[%s8225_s1 + $0x8] sm:$0xff]  ;;  %v69_v6 = vld [vmem:[%s8225_s1 + $0x90] sm:$0xff] }
   0x3   :  { %v6501_v7 = vpack.c.bf16 %v52_v5, %v51_v2  ;;  %v70_v8 = vld [vmem:[%s8225_s1 + $0x98] sm:$0xff]  ;;  %v53_v10 = vld [vmem:[%s8225_s1 + $0x10] sm:$0xff]  ;;  %v71_v12 = vld [vmem:[%s8225_s1 + $0xa0] sm:$0xff] }
   0x4   :  { %6500 = vmatprep.subr.msk.bf16.mxu0 %vm7003_vm1, %v6498_v3  ;;  %v6504_v9 = vpack.c.bf16 %v70_v8, %v69_v6  ;;  %v54_v11 = vld [vmem:[%s8225_s1 + $0x18] sm:$0xff]  ;;  %v72_v13 = vld [vmem:[%s8225_s1 + $0xa8] sm:$0xff]  ;;  %v45_v16 = vld [vmem:[%s8224_s0] sm:$0xff] }
   0x5   :  { %6503 = vmatpush3.bf16.xpose.msk.msra.mxu0 %vm7003_vm1, %v6501_v7  ;;  %v6507_v14 = vpack.c.bf16 %v54_v11, %v53_v10  ;;  %v6510_v15 = vpack.c.bf16 %v72_v13, %v71_v12  ;;  %5853 = vmatprep.mubr.msk.f32.mxu0 %vm116_vm0, %v45_v16  ;;  %v55_v17 = vld [vmem:[%s8225_s1 + $0x20] sm:$0xff]  ;;  %v56_v18 = vld [vmem:[%s8225_s1 + $0x28] sm:$0xff] }
   0x6   :  { %6506 = vmatprep.subr.msk.bf16.mxu0 %vm7003_vm1, %v6504_v9  ;;  %6099 = vmatprep.mubr.msk.f32.mxu1 %vm116_vm0, %v45_v16 }
   0xd   :  { %6509 = vmatpush3.bf16.xpose.msk.msra.mxu0 %vm7003_vm1, %v6507_v14 }
   0xe   :  { %6512 = vmatprep.subr.msk.bf16.mxu0 %vm7003_vm1, %v6510_v15 }
   0xf   :  { %18 = vsyncpa [#allocation3], 0  ;;  %v73_v19 = vld [vmem:[%s8225_s1 + $0xb0] sm:$0xff]  ;;  %v74_v20 = vld [vmem:[%s8225_s1 + $0xb8] sm:$0xff]  ;;  %v6513_v21 = vpack.c.bf16 %v56_v18, %v55_v17  ;;  %v6914_v0 = vmov 0.0   ;;  %vm6915_vm2 = vmmov 0   ;;  %v101_v17 = vlaneseq }
  0x10   :  { %v6516_v22 = vpack.c.bf16 %v74_v20, %v73_v19  ;;  %v57_v23 = vld [vmem:[%s8225_s1 + $0x30] sm:$0xff]  ;;  %v58_v24 = vld [vmem:[%s8225_s1 + $0x38] sm:$0xff]  ;;  %v75_v25 = vld [vmem:[%s8225_s1 + $0xc0] sm:$0xff]  ;;  %vm475_vm3 = vcmask 261120   ;;  %vm932_vm4 = vcmask 64512   ;;  %s6917_s15 = smov 64  }
  0x11   :  { %v76_v26 = vld [vmem:[%s8225_s1 + $0xc8] sm:$0xff]  ;;  %v6519_v27 = vpack.c.bf16 %v58_v24, %v57_v23  ;;  %v59_v29 = vld [vmem:[%s8225_s1 + $0x40] sm:$0xff]  ;;  %v77_v31 = vld [vmem:[%s8225_s1 + $0xd0] sm:$0xff]  ;;  %v102_v18 = vshrl.u32 %v101_v17, 7  ;;  %s6918_s16 = smov 32  }
  0x12   :  { %v6522_v28 = vpack.c.bf16 %v76_v26, %v75_v25  ;;  %v60_v30 = vld [vmem:[%s8225_s1 + $0x48] sm:$0xff]  ;;  %v78_v32 = vld [vmem:[%s8225_s1 + $0xd8] sm:$0xff]  ;;  %v61_v35 = vld [vmem:[%s8225_s1 + $0x50] sm:$0xff] }
  0x13   :  { %v6525_v33 = vpack.c.bf16 %v60_v30, %v59_v29  ;;  %v6528_v34 = vpack.c.bf16 %v78_v32, %v77_v31  ;;  %v62_v36 = vld [vmem:[%s8225_s1 + $0x58] sm:$0xff]  ;;  %v79_v37 = vld [vmem:[%s8225_s1 + $0xe0] sm:$0xff]  ;;  %v80_v38 = vld [vmem:[%s8225_s1 + $0xe8] sm:$0xff]  ;;  %v107_v19 = vsub.s32 1, %v102_v18 }
  0x14   :  { %v6531_v39 = vpack.c.bf16 %v62_v36, %v61_v35  ;;  %v6534_v40 = vpack.c.bf16 %v80_v38, %v79_v37  ;;  %v63_v41 = vld [vmem:[%s8225_s1 + $0x60] sm:$0xff]  ;;  %v64_v42 = vld [vmem:[%s8225_s1 + $0x68] sm:$0xff]  ;;  %v81_v43 = vld [vmem:[%s8225_s1 + $0xf0] sm:$0xff] }
  0x15   :  { %6515 = vmatpush3.bf16.xpose.msk.msra.mxu0 %vm7003_vm1, %v6513_v21  ;;  %v82_v44 = vld [vmem:[%s8225_s1 + $0xf8] sm:$0xff]  ;;  %v6537_v45 = vpack.c.bf16 %v64_v42, %v63_v41  ;;  %v65_v47 = vld [vmem:[%s8225_s1 + $0x70] sm:$0xff]  ;;  %v46_v50 = vld [vmem:[%s8224_s0 + $0x8] sm:$0xff]  ;;  %v103_v21 = vsub.s32 0, %v102_v18 }
  0x16   :  { %6518 = vmatprep.subr.msk.bf16.mxu0 %vm7003_vm1, %v6516_v22  ;;  %v6540_v46 = vpack.c.bf16 %v82_v44, %v81_v43  ;;  %v66_v48 = vld [vmem:[%s8225_s1 + $0x78] sm:$0xff]  ;;  %v47_v51 = vld [vmem:[%s8224_s0 + $0x10] sm:$0xff]  ;;  %v49_v53 = vld [vmem:[%s8224_s0 + $0x20] sm:$0xff] }
  0x17   :  { %v6543_v49 = vpack.c.bf16 %v66_v48, %v65_v47  ;;  %v48_v52 = vld [vmem:[%s8224_s0 + $0x18] sm:$0xff]  ;;  %v50_v54 = vld [vmem:[%s8224_s0 + $0x28] sm:$0xff]  ;;  %v83_v55 = vld [vmem:[%s8225_s1 + $0x100] sm:$0xff]  ;;  %v111_v48 = vsub.s32 2, %v102_v18 }
  0x18   :  { %v84_v56 = vld [vmem:[%s8225_s1 + $0x108] sm:$0xff]  ;;  %v85_v58 = vld [vmem:[%s8225_s1 + $0x110] sm:$0xff]  ;;  %v86_v59 = vld [vmem:[%s8225_s1 + $0x118] sm:$0xff] }
  0x19   :  { %v6546_v57 = vpack.c.bf16 %v84_v56, %v83_v55  ;;  %v6552_v60 = vpack.c.bf16 %v86_v59, %v85_v58  ;;  %v87_v61 = vld [vmem:[%s8225_s1 + $0x120] sm:$0xff]  ;;  %v88_v62 = vld [vmem:[%s8225_s1 + $0x128] sm:$0xff]  ;;  %v89_v1 = vld [vmem:[%s8225_s1 + $0x130] sm:$0xff] }
  0x1a   :  { %v6558_v63 = vpack.c.bf16 %v88_v62, %v87_v61  ;;  %v90_v2 = vld [vmem:[%s8225_s1 + $0x138] sm:$0xff]  ;;  %v91_v5 = vld [vmem:[%s8225_s1 + $0x140] sm:$0xff]  ;;  %v92_v6 = vld [vmem:[%s8225_s1 + $0x148] sm:$0xff] }
  0x1b   :  { %6548 = vmatprep.subr.msk.bf16.mxu1 %vm7003_vm1, %v6546_v57  ;;  %v6564_v3 = vpack.c.bf16 %v90_v2, %v89_v1  ;;  %v6570_v7 = vpack.c.bf16 %v92_v6, %v91_v5  ;;  %v93_v8 = vld [vmem:[%s8225_s1 + $0x150] sm:$0xff]  ;;  %v94_v9 = vld [vmem:[%s8225_s1 + $0x158] sm:$0xff]  ;;  %v95_v11 = vld [vmem:[%s8225_s1 + $0x160] sm:$0xff] }
  0x1c   :  { %6551 = vmatpush3.bf16.xpose.msk.msra.mxu1 %vm7003_vm1, %v6546_v57  ;;  %v6576_v10 = vpack.c.bf16 %v94_v9, %v93_v8  ;;  %v96_v12 = vld [vmem:[%s8225_s1 + $0x168] sm:$0xff]  ;;  %v97_v13 = vld [vmem:[%s8225_s1 + $0x170] sm:$0xff]  ;;  %v98_v15 = vld [vmem:[%s8225_s1 + $0x178] sm:$0xff] }
  0x1d   :  { %6521 = vmatpush3.bf16.xpose.msk.msra.mxu0 %vm7003_vm1, %v6519_v27  ;;  %6554 = vmatprep.subr.msk.bf16.mxu1 %vm7003_vm1, %v6552_v60  ;;  %v6582_v14 = vpack.c.bf16 %v96_v12, %v95_v11  ;;  %v99_v20 = vld [vmem:[%s8226_s2] sm:$0x7]  ;;  %s6916_s2 = smov 96   ;;  %vm7784_vm5 = vmpackc.low %vm475_vm3, %vm475_vm3 }
  0x1e   :  { %6524 = vmatprep.subr.msk.bf16.mxu0 %vm7003_vm1, %v6522_v28  ;;  %v108_v22 = vrot.slane %v99_v20, %v107_v19  ;;  %v104_v24 = vrot.slane %v99_v20, %v103_v21  ;;  %v5787_v4 = vld [vmem:[%s8229_s5] ss:$0 sm:$0xff] }
  0x24   :  { %6557 = vmatpush3.bf16.xpose.msk.msra.mxu1 %vm7003_vm1, %v6552_v60 }
  0x25   :  { %6527 = vmatpush3.bf16.xpose.msk.msra.mxu0 %vm7003_vm1, %v6525_v33  ;;  %6560 = vmatprep.subr.msk.bf16.mxu1 %vm7003_vm1, %v6558_v63 }
  0x26   :  { %6530 = vmatprep.subr.msk.bf16.mxu0 %vm7003_vm1, %v6528_v34 }
  0x2c   :  { %6563 = vmatpush3.bf16.xpose.msk.msra.mxu1 %vm7003_vm1, %v6558_v63 }
  0x2d   :  { %6533 = vmatpush3.bf16.xpose.msk.msra.mxu0 %vm7003_vm1, %v6531_v39  ;;  %6566 = vmatprep.subr.msk.bf16.mxu1 %vm7003_vm1, %v6564_v3 }
  0x2e   :  { %6536 = vmatprep.subr.msk.bf16.mxu0 %vm7003_vm1, %v6534_v40 }
  0x34   :  { %6569 = vmatpush3.bf16.xpose.msk.msra.mxu1 %vm7003_vm1, %v6564_v3 }
  0x35   :  { %6539 = vmatpush3.bf16.xpose.msk.msra.mxu0 %vm7003_vm1, %v6537_v45  ;;  %6572 = vmatprep.subr.msk.bf16.mxu1 %vm7003_vm1, %v6570_v7 }
  0x36   :  { %6542 = vmatprep.subr.msk.bf16.mxu0 %vm7003_vm1, %v6540_v46 }
  0x3c   :  { %6575 = vmatpush3.bf16.xpose.msk.msra.mxu1 %vm7003_vm1, %v6570_v7 }
  0x3d   :  { %6545 = vmatpush3.bf16.xpose.msk.msra.mxu0 %vm7003_vm1, %v6543_v49  ;;  %6578 = vmatprep.subr.msk.bf16.mxu1 %vm7003_vm1, %v6576_v10  ;;  %v112_v49 = vrot.slane %v99_v20, %v111_v48 }
  0x3e   :  { %6108 = vmatprep.subr.mxu0 %v6914_v0 }
  0x44   :  { %5854 = vmatmul.mubr.msk.f32.vlgmr.msra.gmra.mrb[0].mxu0 %vm116_vm0, %v45_v16  ;;  %6581 = vmatpush3.bf16.xpose.msk.msra.mxu1 %vm7003_vm1, %v6576_v10  ;;  %v6588_v16 = vpack.c.bf16 %v98_v15, %v97_v13 }
  0x45   :  { %5855 = vmatprep.mubr.msk.f32.mxu0 %vm116_vm0, %v46_v50  ;;  %6584 = vmatprep.subr.msk.bf16.mxu1 %vm7003_vm1, %v6582_v14 }
  0x48   :  { %5856 = vmatmul.mubr.msk.f32.gmra.mrb[2].mxu0 %vm116_vm0, %v46_v50 }
  0x49   :  { %5857 = vmatprep.mubr.msk.f32.mxu0 %vm116_vm0, %v47_v51 }
  0x4c   :  { %5858 = vmatmul.mubr.msk.f32.gmra.mrb[4].mxu0 %vm116_vm0, %v47_v51  ;;  %6587 = vmatpush3.bf16.xpose.msk.msra.mxu1 %vm7003_vm1, %v6582_v14 }
  0x4d   :  { %5859 = vmatprep.mubr.msk.f32.mxu0 %vm116_vm0, %v48_v52  ;;  %6590 = vmatprep.subr.msk.bf16.mxu1 %vm7003_vm1, %v6588_v16 }
  0x50   :  { %5860 = vmatmul.mubr.msk.f32.gmra.mrb[6].mxu0 %vm116_vm0, %v48_v52 }
  0x51   :  { %5861 = vmatprep.mubr.msk.f32.mxu0 %vm116_vm0, %v49_v53 }
  0x54   :  { %5862 = vmatmul.mubr.msk.f32.gmra.mrb[8].mxu0 %vm116_vm0, %v49_v53  ;;  %6593 = vmatpush3.bf16.xpose.msk.msra.mxu1 %vm7003_vm1, %v6588_v16 }
  0x55   :  { %5863 = vmatprep.mubr.msk.f32.mxu0 %vm116_vm0, %v50_v54  ;;  %6128 = vmatprep.subr.mxu1 %v6914_v0 }
  0x58   :  { %5864 = vmatmul.mubr.msk.f32.gmra.mrb[10].mxu0 %vm116_vm0, %v50_v54 }
  0x59   :  { %6110 = vmatprep.mubr.msk.f32.mxu0 %vm6915_vm2, %v6914_v0 }
  0x5b   :  { %6100 = vmatmul.mubr.msk.f32.vlgmr.msra.gmra.mrb[0].mxu1 %vm116_vm0, %v46_v50 }
  0x5c   :  { %6102 = vmatprep.mubr.msk.f32.mxu1 %vm116_vm0, %v47_v51 }
  0x5f   :  { %6103 = vmatmul.mubr.msk.f32.gmra.mrb[2].mxu1 %vm116_vm0, %v48_v52 }
  0x60   :  { %6105 = vmatprep.mubr.msk.f32.mxu1 %vm116_vm0, %v49_v53 }
  0x63   :  { %6106 = vmatmul.mubr.msk.f32.gmra.mrb[4].mxu1 %vm116_vm0, %v50_v54 }
  0x64   :  { %6130 = vmatprep.mubr.msk.f32.mxu1 %vm6915_vm2, %v6914_v0 }
 0x117   :  { %v345_v23 = vpop.f32.mrb[0].mxu0 }
 0x118   :  { %v347_v25 = vpop.f32.mrb[1].mxu0  ;;  %v7255_v28 = vadd.f32 %v345_v23, %v104_v24 }
 0x119   :  { %v7251_v26 = vadd.f32 %v347_v25, %v108_v22 }
 0x11b   :  { %v351_v27 = vpop.f32.mrb[2].mxu0  ;;  %6109 = vmatpush3.xpose.msk.msra.mxu0 %vm475_vm3, %v7251_v26 }
 0x11c   :  { %v353_v29 = vpop.f32.mrb[3].mxu0  ;;  %6113 = vmatprep.subr.mxu0 %v6914_v0  ;;  %v7266_v32 = vadd.f32 %v351_v27, %v104_v24 }
 0x11d   :  { %v7258_v30 = vadd.f32 %v353_v29, %v108_v22 }
 0x11e   :  { %6111 = vmatmul.mubr.msk.f32.vlgmr.msra.gmra.mrb[12].mxu0 %vm475_vm3, %v7255_v28 }
 0x11f   :  { %v357_v31 = vpop.f32.mrb[4].mxu0  ;;  %6114 = vmatpush3.xpose.msk.msra.mxu0 %vm475_vm3, %v7258_v30  ;;  %6115 = vmatprep.mubr.msk.f32.mxu0 %vm6915_vm2, %v6914_v0 }
 0x120   :  { %v359_v33 = vpop.f32.mrb[5].mxu0  ;;  %6118 = vmatprep.subr.mxu0 %v6914_v0  ;;  %v7271_v35 = vadd.f32 %v357_v31, %v104_v24 }
 0x121   :  { %v7269_v34 = vadd.f32 %v359_v33, %v108_v22 }
 0x122   :  { %6116 = vmatmul.mubr.msk.f32.vlgmr.msra.gmra.mrb[14].mxu0 %vm475_vm3, %v7266_v32 }
 0x123   :  { %v363_v36 = vpop.f32.mrb[6].mxu0  ;;  %6119 = vmatpush3.xpose.msk.msra.mxu0 %vm475_vm3, %v7269_v34  ;;  %6120 = vmatprep.mubr.msk.f32.mxu0 %vm6915_vm2, %v6914_v0 }
 0x124   :  { %v365_v37 = vpop.f32.mrb[7].mxu0  ;;  %6123 = vmatprep.subr.mxu0 %v6914_v0  ;;  %v7282_v39 = vadd.f32 %v363_v36, %v104_v24 }
 0x125   :  { %v7280_v38 = vadd.f32 %v365_v37, %v108_v22 }
 0x126   :  { %6121 = vmatmul.mubr.msk.f32.vlgmr.msra.gmra.mrb[16].mxu0 %vm475_vm3, %v7271_v35 }
 0x127   :  { %6124 = vmatpush3.xpose.msk.msra.mxu0 %vm475_vm3, %v7280_v38  ;;  %v369_v40 = vpop.f32.mrb[8].mxu0  ;;  %6125 = vmatprep.mubr.msk.f32.mxu0 %vm6915_vm2, %v6914_v0 }
 0x128   :  { %v371_v41 = vpop.f32.mrb[9].mxu0  ;;  %6133 = vmatprep.subr.mxu0 %v6914_v0  ;;  %v7293_v43 = vadd.f32 %v369_v40, %v104_v24 }
 0x129   :  { %v7291_v42 = vadd.f32 %v371_v41, %v108_v22 }
 0x12a   :  { %6126 = vmatmul.mubr.msk.f32.vlgmr.msra.gmra.mrb[18].mxu0 %vm475_vm3, %v7282_v39 }
 0x12b   :  { %v375_v44 = vpop.f32.mrb[10].mxu0  ;;  %6135 = vmatprep.mubr.msk.f32.mxu0 %vm6915_vm2, %v6914_v0  ;;  %6129 = vmatpush3.xpose.msk.msra.mxu1 %vm475_vm3, %v7291_v42 }
 0x12c   :  { %v377_v45 = vpop.f32.mrb[11].mxu0  ;;  %6138 = vmatprep.subr.mxu1 %v6914_v0  ;;  %v7304_v47 = vadd.f32 %v375_v44, %v104_v24 }
 0x12d   :  { %v7302_v46 = vadd.f32 %v377_v45, %v108_v22 }
 0x12e   :  { %6131 = vmatmul.mubr.msk.f32.vlgmr.msra.gmra.mrb[6].mxu1 %vm475_vm3, %v7293_v43  ;;  %v6101_v50 = vpop.f32.mrb[0].mxu1 }
 0x12f   :  { %6134 = vmatpush3.xpose.msk.msra.mxu0 %vm475_vm3, %v7302_v46  ;;  %6140 = vmatprep.mubr.msk.f32.mxu1 %vm6915_vm2, %v6914_v0  ;;  %v7317_v51 = vadd.f32 %v6101_v50, %v112_v49  ;;  %v446_v52 = vpop.f32.mrb[1].mxu1 }
 0x130   :  { %6143 = vmatprep.subr.mxu0 %v6914_v0  ;;  %v7319_v53 = vadd.f32 %v446_v52, %v112_v49 }
 0x132   :  { %6136 = vmatmul.mubr.msk.f32.vlgmr.msra.gmra.mrb[20].mxu0 %vm475_vm3, %v7304_v47  ;;  %v6104_v54 = vpop.f32.mrb[2].mxu1  ;;  %6139 = vmatpush3.msra.mxu1 %v7319_v53 }
 0x133   :  { %6145 = vmatprep.mubr.msk.f32.mxu0 %vm6915_vm2, %v6914_v0  ;;  %6144 = vmatpush3.msra.mxu0 %v7317_v51  ;;  %v7324_v55 = vadd.f32 %v6104_v54, %v112_v49  ;;  %v456_v56 = vpop.f32.mrb[3].mxu1 }
 0x134   :  { %6153 = vmatprep.subr.mxu0 %v6914_v0  ;;  %6148 = vmatprep.subr.mxu1 %v6914_v0  ;;  %v7327_v57 = vadd.f32 %v456_v56, %v112_v49 }
 0x136   :  { %v6107_v58 = vpop.f32.mrb[4].mxu1 }
 0x137   :  { %v7329_v59 = vadd.f32 %v6107_v58, %v112_v49  ;;  %v466_v60 = vpop.f32.mrb[5].mxu1 }
 0x138   :  { %v7331_v61 = vadd.f32 %v466_v60, %v112_v49 }
 0x1f1   :  { %v7333_v62 = vpop.f32.mrb[12].mxu0 }
 0x1f2   :  { %v6112_v63 = vpop.f32.mrb[13].mxu0 }
 0x1f5   :  { %v624_v1 = vpop.f32.mrb[14].mxu0 }
 0x1f6   :  { %v936_v2 = vsel %vm932_vm4, %v624_v1, -inf  ;;  %v6117_v3 = vpop.f32.mrb[15].mxu0 }
 0x1f7   :  { %937 = vmax.xlane.f32.xlu0 %v936_v2 }
 0x1f9   :  { %v7336_v5 = vpop.f32.mrb[16].mxu0 }
 0x1fa   :  { %v6122_v6 = vpop.f32.mrb[17].mxu0 }
 0x1fd   :  { %v776_v7 = vpop.f32.mrb[18].mxu0 }
 0x1fe   :  { %v942_v8 = vsel %vm932_vm4, %v776_v7, -inf  ;;  %v6127_v9 = vpop.f32.mrb[19].mxu0 }
 0x1ff   :  { %943 = vmax.xlane.f32.xlu0 %v942_v8 }
 0x201   :  { %v7339_v10 = vpop.f32.mrb[6].mxu1 }
 0x202   :  { %v6132_v11 = vpop.f32.mrb[7].mxu1 }
 0x205   :  { %v928_v12 = vpop.f32.mrb[20].mxu0 }
 0x206   :  { %v948_v13 = vsel %vm932_vm4, %v928_v12, -inf  ;;  %v6137_v14 = vpop.f32.mrb[21].mxu0 }
 0x207   :  { %949 = vmax.xlane.f32.xlu1 %v948_v13 }
 0x284   :  { %v938_v15 = vpop.xlane.xlu0 %937 }
 0x285   :  { %v952_v16 = vsub.f32 %v624_v1, %v938_v15 }
 0x287   :  { %v959_v17 = vmul.f32 1.442695, %v952_v16 }
 0x289   :  { %6764 = vpow2.f32 %v959_v17 }
 0x28c   :  { %v944_v18 = vpop.xlane.xlu0 %943 }
 0x28d   :  { %v954_v19 = vsub.f32 %v776_v7, %v944_v18 }
 0x28f   :  { %v963_v20 = vmul.f32 1.442695, %v954_v19 }
 0x291   :  { %6766 = vpow2.f32 %v963_v20 }
 0x293   :  { %v6765_v21 = vpop.eup %6764 }
 0x294   :  { %v972_v22 = vsel %vm932_vm4, %v6765_v21, 0.0  ;;  %v950_v25 = vpop.xlane.xlu1 %949 }
 0x295   :  { %973 = vadd.xlane.f32.xlu1 %v972_v22  ;;  %v956_v27 = vsub.f32 %v928_v12, %v950_v25 }
 0x297   :  { %v967_v29 = vmul.f32 1.442695, %v956_v27 }
 0x299   :  { %6768 = vpow2.f32 %v967_v29 }
 0x29b   :  { %v6767_v23 = vpop.eup %6766 }
 0x29c   :  { %v978_v24 = vsel %vm932_vm4, %v6767_v23, 0.0 }
 0x29d   :  { %979 = vadd.xlane.f32.xlu0 %v978_v24 }
 0x2a3   :  { %v6769_v31 = vpop.eup %6768 }
 0x2a4   :  { %v984_v33 = vsel %vm932_vm4, %v6769_v31, 0.0 }
 0x2a6   :  { %1523 = vrot.lane.b32.xlu1 %v7266_v32, %s6916_s2 }
 0x2aa   :  { %1681 = vrot.lane.b32.xlu1 %v7280_v38, %s6916_s2 }
 0x2b3   :  { %1525 = vrot.lane.b32.xlu0 %v7258_v30, %s6916_s2 }
 0x2b7   :  { %1837 = vrot.lane.b32.xlu0 %v7302_v46, %s6916_s2 }
 0x2ce   :  { %985 = vadd.xlane.f32.xlu1 %v984_v33 }
 0x2df   :  { %1679 = vrot.lane.b32.xlu1 %v7282_v39, %s6916_s2 }
 0x2e3   :  { %1835 = vrot.lane.b32.xlu1 %v7304_v47, %s6916_s2 }
 0x322   :  { %v974_v36 = vpop.xlane.xlu1 %973 }
 0x323   :  { %6770 = vrcp.f32 %v974_v36 }
 0x326   :  { %v1524_v48 = vpop.permute.xlu1 %1523 }
 0x32a   :  { %v980_v37 = vpop.xlane.xlu0 %979  ;;  %v1682_v49 = vpop.permute.xlu1 %1681 }
 0x32b   :  { %6772 = vrcp.f32 %v980_v37 }
 0x32d   :  { %v6771_v40 = vpop.eup %6770 }
 0x32e   :  { %v990_v41 = vmul.f32 %v6771_v40, %v6765_v21  ;;  %v1526_v56 = vpop.permute.xlu0 %1525 }
 0x330   :  { %6146 = vmatmul.mubr.msk.f32.vlgmr.msra.gmra.mrb[22].mxu0 %vm932_vm4, %v990_v41 }
 0x331   :  { %6154 = vmatpush3.msra.mxu0 %v7324_v55  ;;  %6155 = vmatprep.mubr.msk.f32.mxu0 %vm6915_vm2, %v6914_v0 }
 0x332   :  { %6163 = vmatprep.subr.mxu0 %v6914_v0  ;;  %v1838_v60 = vpop.permute.xlu0 %1837 }
 0x335   :  { %v6773_v44 = vpop.eup %6772 }
 0x336   :  { %v994_v45 = vmul.f32 %v6773_v44, %v6767_v23  ;;  %v933_v44 = vsel %vm932_vm4, %v7333_v62, -inf }
 0x338   :  { %6156 = vmatmul.mubr.msk.f32.vlgmr.msra.gmra.mrb[24].mxu0 %vm932_vm4, %v994_v45  ;;  %v939_v45 = vsel %vm932_vm4, %v7336_v5, -inf }
 0x339   :  { %6164 = vmatpush3.msra.mxu0 %v7329_v59  ;;  %6165 = vmatprep.mubr.msk.f32.mxu0 %vm6915_vm2, %v6914_v0 }
 0x33a   :  { %6173 = vmatprep.subr.mxu0 %v6914_v0 }
 0x35b   :  { %v986_v50 = vpop.xlane.xlu1 %985 }
 0x35c   :  { %6774 = vrcp.f32 %v986_v50 }
 0x35f   :  { %v1680_v58 = vpop.permute.xlu1 %1679 }
 0x363   :  { %v1836_v63 = vpop.permute.xlu1 %1835 }
 0x366   :  { %v6775_v52 = vpop.eup %6774 }
 0x367   :  { %v998_v54 = vmul.f32 %v6775_v52, %v6769_v31 }
 0x369   :  { %6166 = vmatmul.mubr.msk.f32.vlgmr.msra.gmra.mrb[26].mxu0 %vm932_vm4, %v998_v54 }
 0x36a   :  { %6174 = vmatpush3.xpose.msk.msra.mxu0 %vm475_vm3, %v1526_v56  ;;  %6175 = vmatprep.mubr.msk.f32.mxu0 %vm6915_vm2, %v6914_v0 }
 0x36b   :  { %6183 = vmatprep.subr.mxu0 %v6914_v0 }
 0x36d   :  { %6176 = vmatmul.mubr.msk.f32.vlgmr.msra.gmra.mrb[28].mxu0 %vm475_vm3, %v1524_v48  ;;  %v945_v48 = vsel %vm932_vm4, %v7339_v10, -inf }
 0x36e   :  { %6184 = vmatpush3.xpose.msk.msra.mxu0 %vm475_vm3, %v1682_v49  ;;  %6185 = vmatprep.mubr.msk.f32.mxu0 %vm6915_vm2, %v6914_v0 }
 0x36f   :  { %6193 = vmatprep.subr.mxu0 %v6914_v0 }
 0x371   :  { %6186 = vmatmul.mubr.msk.f32.vlgmr.msra.gmra.mrb[30].mxu0 %vm475_vm3, %v1680_v58 }
 0x372   :  { %6194 = vmatpush3.xpose.msk.msra.mxu0 %vm475_vm3, %v1838_v60  ;;  %6195 = vmatprep.mubr.msk.f32.mxu0 %vm6915_vm2, %v6914_v0 }
 0x373   :  { %6203 = vmatprep.subr.mxu0 %v6914_v0 }
 0x375   :  { %6196 = vmatmul.mubr.msk.f32.vlgmr.msra.gmra.mrb[32].mxu0 %vm475_vm3, %v1836_v63 }
 0x376   :  { %6205 = vmatprep.mubr.msk.f32.mxu0 %vm6915_vm2, %v6914_v0 }
 0x403   :  { %v7385_v1 = vpop.f32.mrb[22].mxu0 }
 0x404   :  { %v6147_v2 = vpop.f32.mrb[23].mxu0 }
 0x40b   :  { %v7387_v3 = vpop.f32.mrb[24].mxu0 }
 0x40c   :  { %v6157_v6 = vpop.f32.mrb[25].mxu0 }
 0x43c   :  { %v7389_v7 = vpop.f32.mrb[26].mxu0 }
 0x43d   :  { %v6167_v8 = vpop.f32.mrb[27].mxu0 }
 0x440   :  { %v1597_v9 = vpop.f32.mrb[28].mxu0 }
 0x441   :  { %v6177_v11 = vpop.f32.mrb[29].mxu0  ;;  %v1916_v12 = vsel %vm932_vm4, %v1597_v9, -inf }
 0x442   :  { %1917 = vmax.xlane.f32.xlu0 %v1916_v12 }
 0x444   :  { %v1753_v13 = vpop.f32.mrb[30].mxu0 }
 0x445   :  { %v6187_v14 = vpop.f32.mrb[31].mxu0  ;;  %v1922_v15 = vsel %vm932_vm4, %v1753_v13, -inf }
 0x446   :  { %1923 = vmax.xlane.f32.xlu1 %v1922_v15 }
 0x448   :  { %v1909_v16 = vpop.f32.mrb[32].mxu0 }
 0x449   :  { %v6197_v17 = vpop.f32.mrb[33].mxu0  ;;  %v1928_v18 = vsel %vm932_vm4, %v1909_v16, -inf }
 0x44a   :  { %1929 = vmax.xlane.f32.xlu0 %v1928_v18 }
 0x457   :  { %2211 = vrot.lane.b32.xlu1 %v7324_v55, %s6916_s2 }
 0x45b   :  { %2365 = vrot.lane.b32.xlu1 %v7329_v59, %s6916_s2 }
 0x45f   :  { %2726 = vrot.lane.b32.xlu1 %v7251_v26, %s6917_s15 }
 0x463   :  { %2804 = vrot.lane.b32.xlu1 %v7258_v30, %s6917_s15 }
 0x4cf   :  { %v1918_v19 = vpop.xlane.xlu0 %1917 }
 0x4d0   :  { %v1932_v20 = vsub.f32 %v1597_v9, %v1918_v19 }
 0x4d2   :  { %v1939_v21 = vmul.f32 1.442695, %v1932_v20 }
 0x4d3   :  { %v1924_v22 = vpop.xlane.xlu1 %1923 }
 0x4d4   :  { %6776 = vpow2.f32 %v1939_v21  ;;  %v1934_v23 = vsub.f32 %v1753_v13, %v1924_v22 }
 0x4d6   :  { %v1943_v24 = vmul.f32 1.442695, %v1934_v23 }
 0x4d7   :  { %v1930_v25 = vpop.xlane.xlu0 %1929  ;;  %v2212_v49 = vpop.permute.xlu1 %2211 }
 0x4d8   :  { %6778 = vpow2.f32 %v1943_v24  ;;  %v1936_v27 = vsub.f32 %v1909_v16, %v1930_v25 }
 0x4da   :  { %v1947_v29 = vmul.f32 1.442695, %v1936_v27 }
 0x4db   :  { %v2366_v50 = vpop.permute.xlu1 %2365 }
 0x4dc   :  { %6780 = vpow2.f32 %v1947_v29 }
 0x4de   :  { %v6777_v31 = vpop.eup %6776 }
 0x4df   :  { %v1952_v33 = vsel %vm932_vm4, %v6777_v31, 0.0  ;;  %v2727_v52 = vpop.permute.xlu1 %2726 }
 0x4e0   :  { %1953 = vadd.xlane.f32.xlu0 %v1952_v33 }
 0x4e2   :  { %v6779_v36 = vpop.eup %6778 }
 0x4e3   :  { %v1958_v37 = vsel %vm932_vm4, %v6779_v36, 0.0  ;;  %v2805_v56 = vpop.permute.xlu1 %2804 }
 0x4e4   :  { %1959 = vadd.xlane.f32.xlu0 %v1958_v37 }
 0x4e6   :  { %v6781_v40 = vpop.eup %6780 }
 0x4e7   :  { %v1964_v41 = vsel %vm932_vm4, %v6781_v40, 0.0 }
 0x4e8   :  { %1965 = vadd.xlane.f32.xlu1 %v1964_v41 }
 0x4f9   :  { %2882 = vrot.lane.b32.xlu1 %v7269_v34, %s6917_s15 }
 0x4fa   :  { %2057 = vrot.lane.b32.xlu0 %v7317_v51, %s6916_s2 }
 0x4fd   :  { %2960 = vrot.lane.b32.xlu1 %v7280_v38, %s6917_s15 }
 0x4fe   :  { %2724 = vrot.lane.b32.xlu0 %v7255_v28, %s6917_s15 }
 0x501   :  { %3038 = vrot.lane.b32.xlu1 %v7291_v42, %s6917_s15 }
 0x502   :  { %2802 = vrot.lane.b32.xlu0 %v7266_v32, %s6917_s15 }
 0x505   :  { %3116 = vrot.lane.b32.xlu1 %v7302_v46, %s6917_s15 }
 0x506   :  { %2880 = vrot.lane.b32.xlu0 %v7271_v35, %s6917_s15 }
 0x50a   :  { %2958 = vrot.lane.b32.xlu0 %v7282_v39, %s6917_s15 }
 0x50e   :  { %3036 = vrot.lane.b32.xlu0 %v7293_v43, %s6917_s15 }
 0x512   :  { %3114 = vrot.lane.b32.xlu0 %v7304_v47, %s6917_s15 }
 0x529   :  { %934 = vmax.xlane.f32.xlu1 %v933_v44 }
 0x531   :  { %940 = vmax.xlane.f32.xlu0 %v939_v45 }
 0x535   :  { %946 = vmax.xlane.f32.xlu0 %v945_v48 }
 0x53a   :  { %1447 = vrot.lane.b32.xlu1 %v7251_v26, %s6916_s2 }
 0x53e   :  { %1603 = vrot.lane.b32.xlu1 %v7269_v34, %s6916_s2 }
 0x542   :  { %1601 = vrot.lane.b32.xlu1 %v7271_v35, %s6916_s2 }
 0x546   :  { %1759 = vrot.lane.b32.xlu1 %v7291_v42, %s6916_s2 }
 0x54a   :  { %3258 = vrot.lane.b32.xlu1 %v7319_v53, %s6917_s15 }
 0x56d   :  { %v1954_v54 = vpop.xlane.xlu0 %1953 }
 0x56e   :  { %6782 = vrcp.f32 %v1954_v54 }
 0x571   :  { %v1960_v58 = vpop.xlane.xlu0 %1959 }
 0x572   :  { %6784 = vrcp.f32 %v1960_v58 }
 0x575   :  { %v1966_v60 = vpop.xlane.xlu1 %1965  ;;  %v2058_v63 = vpop.permute.xlu0 %2057 }
 0x576   :  { %6786 = vrcp.f32 %v1966_v60  ;;  %6204 = vmatpush3.msra.mxu0 %v2058_v63 }
 0x577   :  { %6213 = vmatprep.subr.mxu0 %v6914_v0 }
 0x578   :  { %v6783_v2 = vpop.eup %6782 }
 0x579   :  { %v1970_v6 = vmul.f32 %v6783_v2, %v6777_v31  ;;  %v2725_v11 = vpop.permute.xlu0 %2724  ;;  %v2883_v15 = vpop.permute.xlu1 %2882 }
 0x57b   :  { %6206 = vmatmul.mubr.msk.f32.vlgmr.msra.gmra.mrb[34].mxu0 %vm932_vm4, %v1970_v6 }
 0x57c   :  { %v6785_v8 = vpop.eup %6784  ;;  %6214 = vmatpush3.msra.mxu0 %v2212_v49  ;;  %6215 = vmatprep.mubr.msk.f32.mxu0 %vm6915_vm2, %v6914_v0 }
 0x57d   :  { %6223 = vmatprep.subr.mxu0 %v6914_v0  ;;  %v1974_v9 = vmul.f32 %v6785_v8, %v6779_v36  ;;  %v2803_v14 = vpop.permute.xlu0 %2802  ;;  %v2961_v17 = vpop.permute.xlu1 %2960 }
 0x57f   :  { %6216 = vmatmul.mubr.msk.f32.vlgmr.msra.gmra.mrb[36].mxu0 %vm932_vm4, %v1974_v9 }
 0x580   :  { %v6787_v12 = vpop.eup %6786  ;;  %6224 = vmatpush3.msra.mxu0 %v2366_v50  ;;  %6225 = vmatprep.mubr.msk.f32.mxu0 %vm6915_vm2, %v6914_v0 }
 0x581   :  { %v1978_v13 = vmul.f32 %v6787_v12, %v6781_v40  ;;  %6278 = vmatprep.subr.mxu0 %v6914_v0  ;;  %v2881_v16 = vpop.permute.xlu0 %2880  ;;  %v3039_v19 = vpop.permute.xlu1 %3038 }
 0x583   :  { %6226 = vmatmul.mubr.msk.f32.vlgmr.msra.gmra.mrb[38].mxu0 %vm932_vm4, %v1978_v13 }
 0x584   :  { %6280 = vmatprep.mubr.msk.f32.mxu0 %vm6915_vm2, %v6914_v0 }
 0x585   :  { %v2959_v18 = vpop.permute.xlu0 %2958  ;;  %v3117_v21 = vpop.permute.xlu1 %3116 }
 0x587   :  { %6279 = vmatpush3.xpose.msk.msra.mxu0 %vm475_vm3, %v2727_v52 }
 0x588   :  { %6283 = vmatprep.subr.mxu0 %v6914_v0 }
 0x589   :  { %v3037_v20 = vpop.permute.xlu0 %3036 }
 0x58a   :  { %6281 = vmatmul.mubr.msk.f32.vlgmr.msra.gmra.mrb[40].mxu0 %vm475_vm3, %v2725_v11 }
 0x58b   :  { %6284 = vmatpush3.xpose.msk.msra.mxu0 %vm475_vm3, %v2805_v56  ;;  %6285 = vmatprep.mubr.msk.f32.mxu0 %vm6915_vm2, %v6914_v0 }
 0x58c   :  { %6288 = vmatprep.subr.mxu0 %v6914_v0 }
 0x58d   :  { %v3115_v22 = vpop.permute.xlu0 %3114 }
 0x58e   :  { %6286 = vmatmul.mubr.msk.f32.vlgmr.msra.gmra.mrb[42].mxu0 %vm475_vm3, %v2803_v14 }
 0x58f   :  { %6289 = vmatpush3.xpose.msk.msra.mxu0 %vm475_vm3, %v2883_v15  ;;  %6290 = vmatprep.mubr.msk.f32.mxu0 %vm6915_vm2, %v6914_v0 }
 0x590   :  { %6293 = vmatprep.subr.mxu0 %v6914_v0 }
 0x592   :  { %6291 = vmatmul.mubr.msk.f32.vlgmr.msra.gmra.mrb[44].mxu0 %vm475_vm3, %v2881_v16 }
 0x593   :  { %6294 = vmatpush3.xpose.msk.msra.mxu0 %vm475_vm3, %v2961_v17  ;;  %6295 = vmatprep.mubr.msk.f32.mxu0 %vm6915_vm2, %v6914_v0 }
 0x594   :  { %6298 = vmatprep.subr.mxu0 %v6914_v0 }
 0x596   :  { %6296 = vmatmul.mubr.msk.f32.vlgmr.msra.gmra.mrb[46].mxu0 %vm475_vm3, %v2959_v18 }
 0x597   :  { %6299 = vmatpush3.xpose.msk.msra.mxu0 %vm475_vm3, %v3039_v19  ;;  %6300 = vmatprep.mubr.msk.f32.mxu0 %vm6915_vm2, %v6914_v0 }
 0x598   :  { %6303 = vmatprep.subr.mxu0 %v6914_v0 }
 0x59a   :  { %6301 = vmatmul.mubr.msk.f32.vlgmr.msra.gmra.mrb[48].mxu0 %vm475_vm3, %v3037_v20 }
 0x59b   :  { %6304 = vmatpush3.xpose.msk.msra.mxu0 %vm475_vm3, %v3117_v21  ;;  %6305 = vmatprep.mubr.msk.f32.mxu0 %vm6915_vm2, %v6914_v0 }
 0x59c   :  { %6308 = vmatprep.subr.mxu0 %v6914_v0 }
 0x59e   :  { %6306 = vmatmul.mubr.msk.f32.vlgmr.msra.gmra.mrb[50].mxu0 %vm475_vm3, %v3115_v22 }
 0x59f   :  { %6310 = vmatprep.mubr.msk.f32.mxu0 %vm6915_vm2, %v6914_v0 }
 0x5b6   :  { %v935_v23 = vpop.xlane.xlu1 %934 }
 0x5b7   :  { %v951_v24 = vsub.f32 %v7333_v62, %v935_v23 }
 0x5b9   :  { %v957_v25 = vmul.f32 1.442695, %v951_v24 }
 0x5ba   :  { %v7486_v27 = vpop.permute.xlu1 %1447 }
 0x5bb   :  { %6788 = vpow2.f32 %v957_v25 }
 0x5be   :  { %v7488_v29 = vpop.permute.xlu1 %1603  ;;  %v941_v31 = vpop.xlane.xlu0 %940 }
 0x5bf   :  { %v953_v33 = vsub.f32 %v7336_v5, %v941_v31 }
 0x5c1   :  { %v961_v36 = vmul.f32 1.442695, %v953_v33 }
 0x5c2   :  { %v7491_v37 = vpop.permute.xlu1 %1601  ;;  %v947_v40 = vpop.xlane.xlu0 %946 }
 0x5c3   :  { %6790 = vpow2.f32 %v961_v36  ;;  %v955_v41 = vsub.f32 %v7339_v10, %v947_v40 }
 0x5c5   :  { %v6789_v44 = vpop.eup %6788  ;;  %v965_v45 = vmul.f32 1.442695, %v955_v41 }
 0x5c6   :  { %v7494_v48 = vpop.permute.xlu1 %1759  ;;  %v969_v62 = vsel %vm932_vm4, %v6789_v44, 0.0 }
 0x5c7   :  { %6792 = vpow2.f32 %v965_v45  ;;  %970 = vadd.xlane.f32.xlu0 %v969_v62 }
 0x5ca   :  { %v3259_v49 = vpop.permute.xlu1 %3258 }
 0x5cb   :  { %6309 = vmatpush3.msra.mxu0 %v3259_v49 }
 0x5cc   :  { %6313 = vmatprep.subr.mxu0 %v6914_v0 }
 0x5cd   :  { %v6791_v5 = vpop.eup %6790 }
 0x5ce   :  { %v975_v50 = vsel %vm932_vm4, %v6791_v5, 0.0 }
 0x5cf   :  { %976 = vadd.xlane.f32.xlu0 %v975_v50 }
 0x5d1   :  { %v6793_v52 = vpop.eup %6792 }
 0x5d2   :  { %v981_v54 = vsel %vm932_vm4, %v6793_v52, 0.0 }
 0x5d3   :  { %982 = vadd.xlane.f32.xlu0 %v981_v54 }
 0x5e9   :  { %1445 = vrot.lane.b32.xlu0 %v7255_v28, %s6916_s2 }
 0x5ed   :  { %1757 = vrot.lane.b32.xlu0 %v7293_v43, %s6916_s2 }
 0x64e   :  { %v7504_v10 = vpop.f32.mrb[34].mxu0 }
 0x64f   :  { %v6207_v56 = vpop.f32.mrb[35].mxu0 }
 0x652   :  { %v7506_v58 = vpop.f32.mrb[36].mxu0 }
 0x653   :  { %v6217_v60 = vpop.f32.mrb[37].mxu0 }
 0x654   :  { %v971_v63 = vpop.xlane.xlu0 %970 }
 0x655   :  { %6794 = vrcp.f32 %v971_v63 }
 0x656   :  { %v7508_v2 = vpop.f32.mrb[38].mxu0 }
 0x657   :  { %v6227_v6 = vpop.f32.mrb[39].mxu0 }
 0x65c   :  { %v977_v8 = vpop.xlane.xlu0 %976 }
 0x65d   :  { %6796 = vrcp.f32 %v977_v8  ;;  %v2798_v9 = vpop.f32.mrb[40].mxu0 }
 0x65e   :  { %v6282_v11 = vpop.f32.mrb[41].mxu0  ;;  %v3192_v12 = vsel %vm932_vm4, %v2798_v9, -inf }
 0x65f   :  { %v6795_v13 = vpop.eup %6794  ;;  %3193 = vmax.xlane.f32.xlu0 %v3192_v12 }
 0x660   :  { %v988_v14 = vmul.f32 %v6795_v13, %v6789_v44  ;;  %v983_v15 = vpop.xlane.xlu0 %982 }
 0x661   :  { %6798 = vrcp.f32 %v983_v15  ;;  %v2876_v16 = vpop.f32.mrb[42].mxu0 }
 0x662   :  { %v6287_v17 = vpop.f32.mrb[43].mxu0  ;;  %6141 = vmatmul.mubr.msk.f32.vlgmr.msra.gmra.mrb[8].mxu1 %vm932_vm4, %v988_v14  ;;  %v3195_v18 = vsel %vm932_vm4, %v2876_v16, -inf }
 0x663   :  { %6149 = vmatpush3.msra.mxu1 %v7327_v57  ;;  %3196 = vmax.xlane.f32.xlu1 %v3195_v18 }
 0x664   :  { %6150 = vmatprep.mubr.msk.f32.mxu1 %vm6915_vm2, %v6914_v0  ;;  %6158 = vmatprep.subr.mxu1 %v6914_v0  ;;  %v1446_v45 = vpop.permute.xlu0 %1445 }
 0x665   :  { %v2954_v19 = vpop.f32.mrb[44].mxu0 }
 0x666   :  { %v6292_v20 = vpop.f32.mrb[45].mxu0  ;;  %v3198_v21 = vsel %vm932_vm4, %v2954_v19, -inf }
 0x667   :  { %v6797_v22 = vpop.eup %6796  ;;  %3199 = vmax.xlane.f32.xlu0 %v3198_v21 }
 0x668   :  { %v992_v23 = vmul.f32 %v6797_v22, %v6791_v5 }
 0x669   :  { %v3032_v24 = vpop.f32.mrb[46].mxu0 }
 0x66a   :  { %v6297_v25 = vpop.f32.mrb[47].mxu0  ;;  %6151 = vmatmul.mubr.msk.f32.vlgmr.msra.gmra.mrb[10].mxu1 %vm932_vm4, %v992_v23 }
 0x66b   :  { %v6799_v31 = vpop.eup %6798  ;;  %6159 = vmatpush3.msra.mxu1 %v7331_v61  ;;  %6160 = vmatprep.mubr.msk.f32.mxu1 %vm6915_vm2, %v6914_v0 }
 0x66c   :  { %v996_v33 = vmul.f32 %v6799_v31, %v6793_v52  ;;  %6168 = vmatprep.subr.mxu1 %v6914_v0 }
 0x66d   :  { %v3110_v36 = vpop.f32.mrb[48].mxu0 }
 0x66e   :  { %v6302_v40 = vpop.f32.mrb[49].mxu0  ;;  %6161 = vmatmul.mubr.msk.f32.vlgmr.msra.gmra.mrb[12].mxu1 %vm932_vm4, %v996_v33 }
 0x66f   :  { %6170 = vmatprep.mubr.msk.f32.mxu1 %vm6915_vm2, %v6914_v0 }
 0x671   :  { %v7526_v41 = vpop.f32.mrb[50].mxu0 }
 0x672   :  { %6169 = vmatpush3.xpose.msk.msra.mxu1 %vm475_vm3, %v7486_v27  ;;  %v6307_v44 = vpop.f32.mrb[51].mxu0  ;;  %v1758_v27 = vpop.permute.xlu0 %1757 }
 0x673   :  { %6178 = vmatprep.subr.mxu1 %v6914_v0 }
 0x674   :  { %3410 = vrot.lane.b32.xlu1 %v7327_v57, %s6917_s15 }
 0x675   :  { %6171 = vmatmul.mubr.msk.f32.vlgmr.msra.gmra.mrb[14].mxu1 %vm475_vm3, %v1446_v45 }
 0x676   :  { %6179 = vmatpush3.xpose.msk.msra.mxu1 %vm475_vm3, %v7488_v29  ;;  %6180 = vmatprep.mubr.msk.f32.mxu1 %vm6915_vm2, %v6914_v0  ;;  %v3201_v29 = vsel %vm932_vm4, %v3032_v24, -inf }
 0x677   :  { %6188 = vmatprep.subr.mxu1 %v6914_v0 }
 0x679   :  { %6181 = vmatmul.mubr.msk.f32.vlgmr.msra.gmra.mrb[16].mxu1 %vm475_vm3, %v7491_v37  ;;  %v3204_v37 = vsel %vm932_vm4, %v3110_v36, -inf }
 0x67a   :  { %6189 = vmatpush3.xpose.msk.msra.mxu1 %vm475_vm3, %v7494_v48  ;;  %6190 = vmatprep.mubr.msk.f32.mxu1 %vm6915_vm2, %v6914_v0  ;;  %v3207_v48 = vsel %vm932_vm4, %v7526_v41, -inf }
 0x67b   :  { %6198 = vmatprep.subr.mxu1 %v6914_v0 }
 0x67d   :  { %6191 = vmatmul.mubr.msk.f32.vlgmr.msra.gmra.mrb[18].mxu1 %vm475_vm3, %v1758_v27  ;;  %3334 = vrot.lane.b32.xlu0 %v7317_v51, %s6917_s15 }
 0x67e   :  { %6200 = vmatprep.mubr.msk.f32.mxu1 %vm6915_vm2, %v6914_v0 }
 0x698   :  { %3202 = vmax.xlane.f32.xlu1 %v3201_v29 }
 0x69c   :  { %3205 = vmax.xlane.f32.xlu1 %v3204_v37 }
 0x6a0   :  { %3208 = vmax.xlane.f32.xlu1 %v3207_v48 }
 0x6b1   :  { %3486 = vrot.lane.b32.xlu1 %v7324_v55, %s6917_s15 }
 0x6ec   :  { %v3194_v62 = vpop.xlane.xlu0 %3193 }
 0x6ed   :  { %v3210_v49 = vsub.f32 %v2798_v9, %v3194_v62 }
 0x6ef   :  { %v3216_v5 = vmul.f32 1.442695, %v3210_v49 }
 0x6f0   :  { %v3197_v50 = vpop.xlane.xlu1 %3196 }
 0x6f1   :  { %6800 = vpow2.f32 %v3216_v5  ;;  %v3211_v52 = vsub.f32 %v2876_v16, %v3197_v50 }
 0x6f3   :  { %v3218_v54 = vmul.f32 1.442695, %v3211_v52 }
 0x6f4   :  { %v3200_v56 = vpop.xlane.xlu0 %3199  ;;  %v7571_v14 = vpop.permute.xlu1 %3410 }
 0x6f5   :  { %6802 = vpow2.f32 %v3218_v54  ;;  %v3212_v60 = vsub.f32 %v2954_v19, %v3200_v56 }
 0x6f7   :  { %v3220_v63 = vmul.f32 1.442695, %v3212_v60 }
 0x6f9   :  { %6804 = vpow2.f32 %v3220_v63 }
 0x6fb   :  { %v7557_v6 = vpop.eup %6800 }
 0x6fc   :  { %v3228_v8 = vsel %vm932_vm4, %v7557_v6, 0.0 }
 0x6fd   :  { %3229 = vadd.xlane.f32.xlu1 %v3228_v8 }
 0x6ff   :  { %v7561_v11 = vpop.eup %6802 }
 0x700   :  { %v3231_v9 = vsel %vm932_vm4, %v7561_v11, 0.0 }
 0x701   :  { %3232 = vadd.xlane.f32.xlu0 %v3231_v9 }
 0x703   :  { %v7565_v12 = vpop.eup %6804 }
 0x704   :  { %v3234_v13 = vsel %vm932_vm4, %v7565_v12, 0.0 }
 0x705   :  { %3235 = vadd.xlane.f32.xlu0 %v3234_v13 }
 0x70e   :  { %3562 = vrot.lane.b32.xlu1 %v7331_v61, %s6917_s15 }
 0x725   :  { %v3203_v15 = vpop.xlane.xlu1 %3202 }
 0x726   :  { %v3213_v16 = vsub.f32 %v3032_v24, %v3203_v15 }
 0x728   :  { %v3222_v17 = vmul.f32 1.442695, %v3213_v16 }
 0x729   :  { %v3206_v18 = vpop.xlane.xlu1 %3205 }
 0x72a   :  { %6806 = vpow2.f32 %v3222_v17  ;;  %v3214_v19 = vsub.f32 %v3110_v36, %v3206_v18 }
 0x72c   :  { %v3224_v20 = vmul.f32 1.442695, %v3214_v19 }
 0x72d   :  { %v3209_v49 = vpop.xlane.xlu1 %3208 }
 0x72e   :  { %6808 = vpow2.f32 %v3224_v20  ;;  %v3215_v5 = vsub.f32 %v7526_v41, %v3209_v49 }
 0x734   :  { %v7573_v21 = vpop.eup %6806 }
 0x735   :  { %v7575_v22 = vpop.f32.mrb[8].mxu1  ;;  %v3237_v23 = vsel %vm932_vm4, %v7573_v21, 0.0 }
 0x736   :  { %3238 = vadd.xlane.f32.xlu0 %v3237_v23  ;;  %v6142_v25 = vpop.f32.mrb[9].mxu1 }
 0x738   :  { %v7579_v31 = vpop.eup %6808 }
 0x739   :  { %v3240_v24 = vsel %vm932_vm4, %v7579_v31, 0.0 }
 0x73a   :  { %3241 = vadd.xlane.f32.xlu1 %v3240_v24 }
 0x73d   :  { %v7583_v33 = vpop.f32.mrb[10].mxu1 }
 0x73e   :  { %v6152_v36 = vpop.f32.mrb[11].mxu1 }
 0x741   :  { %v7585_v40 = vpop.f32.mrb[12].mxu1 }
 0x742   :  { %v6162_v44 = vpop.f32.mrb[13].mxu1 }
 0x748   :  { %v7587_v45 = vpop.f32.mrb[14].mxu1 }
 0x749   :  { %v6172_v27 = vpop.f32.mrb[15].mxu1 }
 0x74b   :  { %3868 = vrot.lane.b32.xlu1 %v7251_v26, %s6918_s16  ;;  %v3226_v26 = vmul.f32 1.442695, %v3215_v5 }
 0x74c   :  { %v7591_v29 = vpop.f32.mrb[16].mxu1  ;;  %3638 = vrot.lane.b32.xlu0 %v7329_v59, %s6917_s15 }
 0x74d   :  { %v6182_v37 = vpop.f32.mrb[17].mxu1  ;;  %6810 = vpow2.f32 %v3226_v26  ;;  %v1919_v54 = vsel %vm932_vm4, %v7591_v29, -inf }
 0x74f   :  { %3946 = vrot.lane.b32.xlu1 %v7258_v30, %s6918_s16 }
 0x750   :  { %v7597_v48 = vpop.f32.mrb[18].mxu1 }
 0x751   :  { %v6192_v62 = vpop.f32.mrb[19].mxu1  ;;  %v1925_v56 = vsel %vm932_vm4, %v7597_v48, -inf }
 0x753   :  { %4024 = vrot.lane.b32.xlu1 %v7269_v34, %s6918_s16  ;;  %v1913_v34 = vsel %vm932_vm4, %v7587_v45, -inf }
 0x757   :  { %4102 = vrot.lane.b32.xlu1 %v7280_v38, %s6918_s16  ;;  %v7608_v30 = vpop.eup %6810  ;;  %v3487_v38 = vpop.permute.xlu1 %3486 }
 0x758   :  { %v3243_v50 = vsel %vm932_vm4, %v7608_v30, 0.0 }
 0x75b   :  { %4180 = vrot.lane.b32.xlu1 %v7291_v42, %s6918_s16  ;;  %v3335_v42 = vpop.permute.xlu0 %3334 }
 0x75f   :  { %4258 = vrot.lane.b32.xlu1 %v7302_v46, %s6918_s16 }
 0x76b   :  { %3244 = vadd.xlane.f32.xlu0 %v3243_v50 }
 0x781   :  { %3866 = vrot.lane.b32.xlu0 %v7255_v28, %s6918_s16 }
 0x783   :  { %1914 = vmax.xlane.f32.xlu1 %v1913_v34 }
 0x785   :  { %3944 = vrot.lane.b32.xlu0 %v7266_v32, %s6918_s16 }
 0x789   :  { %4022 = vrot.lane.b32.xlu0 %v7271_v35, %s6918_s16 }
 0x78a   :  { %v3230_v46 = vpop.xlane.xlu1 %3229 }
 0x78b   :  { %6812 = vrcp.f32 %v3230_v46 }
 0x78d   :  { %4100 = vrot.lane.b32.xlu0 %v7282_v39, %s6918_s16 }
 0x78e   :  { %v3233_v41 = vpop.xlane.xlu0 %3232  ;;  %v3563_v60 = vpop.permute.xlu1 %3562 }
 0x78f   :  { %6814 = vrcp.f32 %v3233_v41 }
 0x791   :  { %4178 = vrot.lane.b32.xlu0 %v7293_v43, %s6918_s16 }
 0x792   :  { %v3236_v28 = vpop.xlane.xlu0 %3235 }
 0x793   :  { %6816 = vrcp.f32 %v3236_v28 }
 0x795   :  { %v6813_v52 = vpop.eup %6812  ;;  %4256 = vrot.lane.b32.xlu0 %v7304_v47, %s6918_s16 }
 0x796   :  { %v3247_v32 = vmul.f32 %v6813_v52, %v7557_v6 }
 0x798   :  { %6311 = vmatmul.mubr.msk.f32.vlgmr.msra.gmra.mrb[52].mxu0 %vm932_vm4, %v3247_v32 }
 0x799   :  { %v6815_v35 = vpop.eup %6814  ;;  %6314 = vmatpush3.msra.mxu0 %v3335_v42  ;;  %6315 = vmatprep.mubr.msk.f32.mxu0 %vm6915_vm2, %v6914_v0 }
 0x79a   :  { %v3249_v39 = vmul.f32 %v6815_v35, %v7561_v11  ;;  %6318 = vmatprep.subr.mxu0 %v6914_v0 }
 0x79c   :  { %6316 = vmatmul.mubr.msk.f32.vlgmr.msra.gmra.mrb[54].mxu0 %vm932_vm4, %v3249_v39 }
 0x79d   :  { %v6817_v43 = vpop.eup %6816  ;;  %6319 = vmatpush3.msra.mxu0 %v7571_v14  ;;  %6320 = vmatprep.mubr.msk.f32.mxu0 %vm6915_vm2, %v6914_v0 }
 0x79e   :  { %v3251_v47 = vmul.f32 %v6817_v43, %v7565_v12  ;;  %6323 = vmatprep.subr.mxu0 %v6914_v0 }
 0x7a0   :  { %6321 = vmatmul.mubr.msk.f32.vlgmr.msra.gmra.mrb[56].mxu0 %vm932_vm4, %v3251_v47 }
 0x7a1   :  { %6324 = vmatpush3.msra.mxu0 %v3487_v38  ;;  %6325 = vmatprep.mubr.msk.f32.mxu0 %vm6915_vm2, %v6914_v0 }
 0x7a2   :  { %6328 = vmatprep.subr.mxu0 %v6914_v0 }
 0x7b4   :  { %1920 = vmax.xlane.f32.xlu0 %v1919_v54 }
 0x7b8   :  { %1926 = vmax.xlane.f32.xlu0 %v1925_v56 }
 0x7c3   :  { %v3239_v63 = vpop.xlane.xlu0 %3238 }
 0x7c4   :  { %6818 = vrcp.f32 %v3239_v63 }
 0x7c7   :  { %v3242_v6 = vpop.xlane.xlu1 %3241  ;;  %v3639_v13 = vpop.permute.xlu0 %3638 }
 0x7c8   :  { %6820 = vrcp.f32 %v3242_v6 }
 0x7cb   :  { %v3869_v14 = vpop.permute.xlu1 %3868 }
 0x7ce   :  { %v6819_v8 = vpop.eup %6818 }
 0x7cf   :  { %v3253_v11 = vmul.f32 %v6819_v8, %v7573_v21  ;;  %v3947_v15 = vpop.permute.xlu1 %3946 }
 0x7d1   :  { %6326 = vmatmul.mubr.msk.f32.vlgmr.msra.gmra.mrb[58].mxu0 %vm932_vm4, %v3253_v11 }
 0x7d2   :  { %v6821_v9 = vpop.eup %6820  ;;  %6329 = vmatpush3.msra.mxu0 %v3563_v60  ;;  %6330 = vmatprep.mubr.msk.f32.mxu0 %vm6915_vm2, %v6914_v0 }
 0x7d3   :  { %v3255_v12 = vmul.f32 %v6821_v9, %v7579_v31  ;;  %6333 = vmatprep.subr.mxu0 %v6914_v0  ;;  %v4025_v17 = vpop.permute.xlu1 %4024 }
 0x7d5   :  { %6331 = vmatmul.mubr.msk.f32.vlgmr.msra.gmra.mrb[60].mxu0 %vm932_vm4, %v3255_v12 }
 0x7d6   :  { %6334 = vmatpush3.msra.mxu0 %v3639_v13  ;;  %6335 = vmatprep.mubr.msk.f32.mxu0 %vm6915_vm2, %v6914_v0 }
 0x7d7   :  { %6363 = vmatprep.subr.mxu0 %v6914_v0  ;;  %v4103_v19 = vpop.permute.xlu1 %4102 }
 0x7db   :  { %v4181_v25 = vpop.permute.xlu1 %4180 }
 0x7df   :  { %v4259_v24 = vpop.permute.xlu1 %4258 }
 0x7f8   :  { %v3245_v16 = vpop.xlane.xlu0 %3244 }
 0x7f9   :  { %6822 = vrcp.f32 %v3245_v16 }
 0x7fc   :  { %v3867_v18 = vpop.permute.xlu0 %3866 }
 0x800   :  { %v3945_v23 = vpop.permute.xlu0 %3944 }
 0x803   :  { %v6823_v20 = vpop.eup %6822 }
 0x804   :  { %v3257_v21 = vmul.f32 %v6823_v20, %v7608_v30  ;;  %v4023_v31 = vpop.permute.xlu0 %4022 }
 0x806   :  { %6336 = vmatmul.mubr.msk.f32.vlgmr.msra.gmra.mrb[62].mxu0 %vm932_vm4, %v3257_v21 }
 0x807   :  { %6364 = vmatpush3.xpose.msk.msra.mxu0 %vm475_vm3, %v3869_v14  ;;  %6365 = vmatprep.mubr.msk.f32.mxu0 %vm6915_vm2, %v6914_v0 }
 0x808   :  { %6368 = vmatprep.subr.mxu0 %v6914_v0  ;;  %v4101_v44 = vpop.permute.xlu0 %4100 }
 0x80a   :  { %6366 = vmatmul.mubr.msk.f32.vlgmr.msra.gmra.mrb[64].mxu0 %vm475_vm3, %v3867_v18 }
 0x80b   :  { %6369 = vmatpush3.xpose.msk.msra.mxu0 %vm475_vm3, %v3947_v15  ;;  %6370 = vmatprep.mubr.msk.f32.mxu0 %vm6915_vm2, %v6914_v0 }
 0x80c   :  { %6373 = vmatprep.subr.mxu0 %v6914_v0  ;;  %v4179_v62 = vpop.permute.xlu0 %4178 }
 0x80e   :  { %6371 = vmatmul.mubr.msk.f32.vlgmr.msra.gmra.mrb[66].mxu0 %vm475_vm3, %v3945_v23 }
 0x80f   :  { %6374 = vmatpush3.xpose.msk.msra.mxu0 %vm475_vm3, %v4025_v17  ;;  %6375 = vmatprep.mubr.msk.f32.mxu0 %vm6915_vm2, %v6914_v0 }
 0x810   :  { %v1915_v36 = vpop.xlane.xlu1 %1914  ;;  %6378 = vmatprep.subr.mxu0 %v6914_v0 }
 0x811   :  { %v1931_v27 = vsub.f32 %v7587_v45, %v1915_v36  ;;  %v4257_v45 = vpop.permute.xlu0 %4256 }
 0x812   :  { %6376 = vmatmul.mubr.msk.f32.vlgmr.msra.gmra.mrb[68].mxu0 %vm475_vm3, %v4023_v31 }
 0x813   :  { %v1937_v37 = vmul.f32 1.442695, %v1931_v27  ;;  %6379 = vmatpush3.xpose.msk.msra.mxu0 %vm475_vm3, %v4103_v19  ;;  %6380 = vmatprep.mubr.msk.f32.mxu0 %vm6915_vm2, %v6914_v0 }
 0x814   :  { %6383 = vmatprep.subr.mxu0 %v6914_v0 }
 0x815   :  { %6824 = vpow2.f32 %v1937_v37 }
 0x816   :  { %6381 = vmatmul.mubr.msk.f32.vlgmr.msra.gmra.mrb[70].mxu0 %vm475_vm3, %v4101_v44 }
 0x817   :  { %6384 = vmatpush3.xpose.msk.msra.mxu0 %vm475_vm3, %v4181_v25  ;;  %6385 = vmatprep.mubr.msk.f32.mxu0 %vm6915_vm2, %v6914_v0 }
 0x818   :  { %6388 = vmatprep.subr.mxu0 %v6914_v0 }
 0x81a   :  { %6386 = vmatmul.mubr.msk.f32.vlgmr.msra.gmra.mrb[72].mxu0 %vm475_vm3, %v4179_v62 }
 0x81b   :  { %6389 = vmatpush3.xpose.msk.msra.mxu0 %vm475_vm3, %v4259_v24  ;;  %6390 = vmatprep.mubr.msk.f32.mxu0 %vm6915_vm2, %v6914_v0 }
 0x81c   :  { %6393 = vmatprep.subr.mxu0 %v6914_v0 }
 0x81e   :  { %6391 = vmatmul.mubr.msk.f32.vlgmr.msra.gmra.mrb[74].mxu0 %vm475_vm3, %v4257_v45 }
 0x81f   :  { %v7689_v49 = vpop.eup %6824  ;;  %6395 = vmatprep.mubr.msk.f32.mxu0 %vm6915_vm2, %v6914_v0 }
 0x820   :  { %v1949_v5 = vsel %vm932_vm4, %v7689_v49, 0.0 }
 0x821   :  { %1950 = vadd.xlane.f32.xlu1 %v1949_v5 }
 0x841   :  { %v1921_v26 = vpop.xlane.xlu0 %1920 }
 0x842   :  { %v1933_v30 = vsub.f32 %v7591_v29, %v1921_v26 }
 0x844   :  { %v1941_v50 = vmul.f32 1.442695, %v1933_v30 }
 0x845   :  { %v1927_v54 = vpop.xlane.xlu0 %1926 }
 0x846   :  { %6826 = vpow2.f32 %v1941_v50  ;;  %v1935_v60 = vsub.f32 %v7597_v48, %v1927_v54 }
 0x848   :  { %v1945_v11 = vmul.f32 1.442695, %v1935_v60 }
 0x84a   :  { %6828 = vpow2.f32 %v1945_v11 }
 0x850   :  { %v7696_v34 = vpop.eup %6826 }
 0x851   :  { %v1955_v38 = vsel %vm932_vm4, %v7696_v34, 0.0 }
 0x852   :  { %1956 = vadd.xlane.f32.xlu1 %v1955_v38 }
 0x854   :  { %v7718_v23 = vpop.eup %6828 }
 0x855   :  { %v1961_v24 = vsel %vm932_vm4, %v7718_v23, 0.0 }
 0x86b   :  { %v7700_v42 = vpop.f32.mrb[52].mxu0 }
 0x86c   :  { %v6312_v46 = vpop.f32.mrb[53].mxu0 }
 0x86f   :  { %v7702_v41 = vpop.f32.mrb[54].mxu0 }
 0x870   :  { %v6317_v28 = vpop.f32.mrb[55].mxu0 }
 0x873   :  { %v7704_v52 = vpop.f32.mrb[56].mxu0 }
 0x874   :  { %v6322_v32 = vpop.f32.mrb[57].mxu0 }
 0x8a4   :  { %v7706_v35 = vpop.f32.mrb[58].mxu0 }
 0x8a5   :  { %v6327_v29 = vpop.f32.mrb[59].mxu0 }
 0x8a8   :  { %v7708_v39 = vpop.f32.mrb[60].mxu0 }
 0x8a9   :  { %v6332_v43 = vpop.f32.mrb[61].mxu0 }
 0x8ae   :  { %v1951_v44 = vpop.xlane.xlu1 %1950 }
 0x8d9   :  { %v7710_v47 = vpop.f32.mrb[62].mxu0 }
 0x8da   :  { %v6337_v56 = vpop.f32.mrb[63].mxu0 }
 0x8dd   :  { %v3940_v63 = vpop.f32.mrb[64].mxu0 }
 0x8de   :  { %v6367_v6 = vpop.f32.mrb[65].mxu0  ;;  %v4334_v8 = vsel %vm932_vm4, %v3940_v63, -inf }
 0x8df   :  { %4335 = vmax.xlane.f32.xlu0 %v4334_v8  ;;  %v1957_v45 = vpop.xlane.xlu1 %1956 }
 0x8e1   :  { %v4018_v9 = vpop.f32.mrb[66].mxu0 }
 0x8e2   :  { %v6372_v12 = vpop.f32.mrb[67].mxu0  ;;  %v4337_v13 = vsel %vm932_vm4, %v4018_v9, -inf }
 0x8e3   :  { %4338 = vmax.xlane.f32.xlu0 %v4337_v13 }
 0x8e5   :  { %v4096_v14 = vpop.f32.mrb[68].mxu0 }
 0x8e6   :  { %v6377_v15 = vpop.f32.mrb[69].mxu0  ;;  %v4340_v16 = vsel %vm932_vm4, %v4096_v14, -inf }
 0x8e7   :  { %4341 = vmax.xlane.f32.xlu1 %v4340_v16 }
 0x8e9   :  { %v4174_v17 = vpop.f32.mrb[70].mxu0 }
 0x8ea   :  { %v6382_v18 = vpop.f32.mrb[71].mxu0  ;;  %v4343_v48 = vsel %vm932_vm4, %v4174_v17, -inf }
 0x8eb   :  { %4344 = vmax.xlane.f32.xlu0 %v4343_v48 }
 0x8ed   :  { %v4252_v19 = vpop.f32.mrb[72].mxu0 }
 0x8ee   :  { %v6387_v20 = vpop.f32.mrb[73].mxu0  ;;  %v4346_v21 = vsel %vm932_vm4, %v4252_v19, -inf }
 0x8ef   :  { %4347 = vmax.xlane.f32.xlu1 %v4346_v21 }
 0x8f1   :  { %v7720_v25 = vpop.f32.mrb[74].mxu0 }
 0x8f2   :  { %v6392_v31 = vpop.f32.mrb[75].mxu0  ;;  %v4349_v36 = vsel %vm932_vm4, %v7720_v25, -inf }
 0x8f3   :  { %1962 = vadd.xlane.f32.xlu1 %v1961_v24  ;;  %4350 = vmax.xlane.f32.xlu0 %v4349_v36  ;;  %v5670_v36 = vld [vmem:[%s8227_s3 + $0x40] sm:$0xff] }
 0x904   :  { %2134 = vrot.lane.b32.xlu1 %v7327_v57, %s6916_s2 }
 0x908   :  { %2288 = vrot.lane.b32.xlu1 %v7331_v61, %s6916_s2 }
 0x909   :  { %1980 = vrot.lane.b32.xlu0 %v7319_v53, %s6916_s2 }
 0x90c   :  { %4476 = vrot.lane.b32.xlu1 %v7317_v51, %s6918_s16 }
 0x90d   :  { %4400 = vrot.lane.b32.xlu0 %v7319_v53, %s6918_s16 }
 0x910   :  { %4552 = vrot.lane.b32.xlu1 %v7327_v57, %s6918_s16 }
 0x96c   :  { %v4336_v27 = vpop.xlane.xlu0 %4335 }
 0x96d   :  { %v4352_v37 = vsub.f32 %v3940_v63, %v4336_v27 }
 0x96f   :  { %v4358_v62 = vmul.f32 1.442695, %v4352_v37 }
 0x970   :  { %v4339_v5 = vpop.xlane.xlu0 %4338 }
 0x971   :  { %6830 = vpow2.f32 %v4358_v62  ;;  %v4353_v26 = vsub.f32 %v4018_v9, %v4339_v5  ;;  %v5675_v5 = vld [vmem:[%s8227_s3 + $0x68] sm:$0xff] }
 0x973   :  { %v4360_v30 = vmul.f32 1.442695, %v4353_v26 }
 0x974   :  { %v4342_v50 = vpop.xlane.xlu1 %4341 }
 0x975   :  { %6832 = vpow2.f32 %v4360_v30  ;;  %v4354_v38 = vsub.f32 %v4096_v14, %v4342_v50  ;;  %v5676_v30 = vld [vmem:[%s8227_s3 + $0x70] sm:$0xff] }
 0x976   :  { %6834 = vrcp.f32 %v1951_v44 }
 0x977   :  { %v4362_v51 = vmul.f32 1.442695, %v4354_v38  ;;  %v1437_v38 = vld [vmem:[%s8227_s3] sm:$0xff] }
 0x978   :  { %v4345_v46 = vpop.xlane.xlu0 %4344 }
 0x979   :  { %6836 = vpow2.f32 %v4362_v51  ;;  %v4355_v53 = vsub.f32 %v4174_v17, %v4345_v46  ;;  %v1438_v51 = vld [vmem:[%s8227_s3 + $0x8] sm:$0xff] }
 0x97a   :  { %6838 = vrcp.f32 %v1957_v45  ;;  %v5674_v45 = vld [vmem:[%s8227_s3 + $0x60] sm:$0xff]  ;;  %v6618_v46 = vpack.c.bf16 %v1438_v51, %v1437_v38  ;;  %v5767_v38 = vld [vmem:[%s8227_s3 + $0xd8] sm:$0xff] }
 0x97b   :  { %v7738_v28 = vpop.eup %6830  ;;  %v4364_v57 = vmul.f32 1.442695, %v4355_v53  ;;  %v6606_v26 = vpack.c.bf16 %v5675_v5, %v5674_v45  ;;  %v5727_v45 = vld [vmem:[%s8227_s3 + $0x98] sm:$0xff] }
 0x97c   :  { %v4348_v32 = vpop.xlane.xlu1 %4347  ;;  %v4370_v29 = vsel %vm932_vm4, %v7738_v28, 0.0 }
 0x97d   :  { %6840 = vpow2.f32 %v4364_v57  ;;  %v4356_v43 = vsub.f32 %v4252_v19, %v4348_v32  ;;  %4371 = vadd.xlane.f32.xlu0 %v4370_v29 }
 0x97f   :  { %v7742_v54 = vpop.eup %6832  ;;  %v4366_v56 = vmul.f32 1.442695, %v4356_v43 }
 0x980   :  { %v1963_v60 = vpop.xlane.xlu1 %1962  ;;  %v4351_v63 = vpop.xlane.xlu0 %4350  ;;  %v4373_v6 = vsel %vm932_vm4, %v7742_v54, 0.0 }
 0x981   :  { %v6835_v8 = vpop.eup %6834  ;;  %6842 = vpow2.f32 %v4366_v56  ;;  %4374 = vadd.xlane.f32.xlu1 %v4373_v6  ;;  %v4357_v31 = vsub.f32 %v7720_v25, %v4351_v63  ;;  %v5673_v25 = vld [vmem:[%s8227_s3 + $0x58] sm:$0xff] }
 0x982   :  { %6844 = vrcp.f32 %v1963_v60  ;;  %v1968_v9 = vmul.f32 %v6835_v8, %v7689_v49 }
 0x983   :  { %v7746_v11 = vpop.eup %6836  ;;  %v4368_v24 = vmul.f32 1.442695, %v4357_v31 }
 0x984   :  { %v2135_v12 = vpop.permute.xlu1 %2134  ;;  %v1981_v13 = vpop.permute.xlu0 %1980  ;;  %v4376_v14 = vsel %vm932_vm4, %v7746_v11, 0.0 }
 0x985   :  { %v6839_v15 = vpop.eup %6838  ;;  %4377 = vadd.xlane.f32.xlu0 %v4376_v14  ;;  %6199 = vmatpush3.msra.mxu1 %v1981_v13  ;;  %6846 = vpow2.f32 %v4368_v24 }
 0x986   :  { %6201 = vmatmul.mubr.msk.f32.vlgmr.msra.gmra.mrb[20].mxu1 %vm932_vm4, %v1968_v9  ;;  %6208 = vmatprep.subr.mxu1 %v6914_v0  ;;  %v1972_v49 = vmul.f32 %v6839_v15, %v7696_v34 }
 0x987   :  { %v7753_v16 = vpop.eup %6840  ;;  %6209 = vmatpush3.msra.mxu1 %v2135_v12  ;;  %6210 = vmatprep.mubr.msk.f32.mxu1 %vm6915_vm2, %v6914_v0 }
 0x988   :  { %v2289_v17 = vpop.permute.xlu1 %2288  ;;  %v4401_v18 = vpop.permute.xlu0 %4400  ;;  %v4379_v48 = vsel %vm932_vm4, %v7753_v16, 0.0  ;;  %6218 = vmatprep.subr.mxu1 %v6914_v0 }
 0x989   :  { %4380 = vadd.xlane.f32.xlu0 %v4379_v48  ;;  %6394 = vmatpush3.msra.mxu0 %v4401_v18 }
 0x98a   :  { %6211 = vmatmul.mubr.msk.f32.vlgmr.msra.gmra.mrb[22].mxu1 %vm932_vm4, %v1972_v49  ;;  %6398 = vmatprep.subr.mxu0 %v6914_v0 }
 0x98b   :  { %v7763_v19 = vpop.eup %6842  ;;  %6219 = vmatpush3.msra.mxu1 %v2289_v17  ;;  %6220 = vmatprep.mubr.msk.f32.mxu1 %vm6915_vm2, %v6914_v0 }
 0x98c   :  { %v6845_v34 = vpop.eup %6844  ;;  %v4382_v20 = vsel %vm932_vm4, %v7763_v19, 0.0  ;;  %v4477_v53 = vpop.permute.xlu1 %4476 }
 0x98d   :  { %v1976_v21 = vmul.f32 %v6845_v34, %v7718_v23  ;;  %4383 = vadd.xlane.f32.xlu0 %v4382_v20  ;;  %v5671_v23 = vld [vmem:[%s8227_s3 + $0x48] sm:$0xff]  ;;  %v1440_v34 = vld [vmem:[%s8227_s3 + $0x18] sm:$0xff] }
 0x98f   :  { %6221 = vmatmul.mubr.msk.f32.vlgmr.msra.gmra.mrb[24].mxu1 %vm932_vm4, %v1976_v21  ;;  %v7800_v37 = vpop.eup %6846 }
 0x990   :  { %v4385_v62 = vsel %vm932_vm4, %v7800_v37, 0.0  ;;  %v4553_v57 = vpop.permute.xlu1 %4552 }
 0x992   :  { %4628 = vrot.lane.b32.xlu1 %v7324_v55, %s6918_s16  ;;  %v6594_v55 = vpack.c.bf16 %v5671_v23, %v5670_v36  ;;  %v1441_v36 = vld [vmem:[%s8227_s3 + $0x20] sm:$0xff] }
 0x994   :  { %6596 = vmatprep.subr.msk.bf16.mxu1 %vm7784_vm5, %v6594_v55 }
 0x995   :  { %6599 = vmatpush3.bf16.xpose.msk.msra.mxu1 %vm7784_vm5, %v6594_v55 }
 0x9a3   :  { %4704 = vrot.lane.b32.xlu0 %v7331_v61, %s6918_s16  ;;  %v5672_v61 = vld [vmem:[%s8227_s3 + $0x50] sm:$0xff] }
 0x9a4   :  { %v6600_v27 = vpack.c.bf16 %v5673_v25, %v5672_v61  ;;  %v1444_v25 = vld [vmem:[%s8227_s3 + $0x38] sm:$0xff] }
 0x9a6   :  { %6602 = vmatprep.subr.msk.bf16.mxu1 %vm7784_vm5, %v6600_v27 }
 0x9a7   :  { %6605 = vmatpush3.bf16.xpose.msk.msra.mxu1 %vm7784_vm5, %v6600_v27 }
 0x9a8   :  { %6608 = vmatprep.subr.msk.bf16.mxu1 %vm7784_vm5, %v6606_v26 }
 0x9af   :  { %6611 = vmatpush3.bf16.xpose.msk.msra.mxu1 %vm7784_vm5, %v6606_v26  ;;  %v5728_v26 = vld [vmem:[%s8227_s3 + $0xa0] sm:$0xff] }
 0x9b6   :  { %4386 = vadd.xlane.f32.xlu1 %v4385_v62  ;;  %v5726_v62 = vld [vmem:[%s8227_s3 + $0x90] sm:$0xff] }
 0x9b7   :  { %v6648_v5 = vpack.c.bf16 %v5727_v45, %v5726_v62  ;;  %v5132_v45 = vld [vmem:[%s8231_s7] sm:$0xff] }
 0x9c7   :  { %4780 = vrot.lane.b32.xlu1 %v7329_v59, %s6918_s16  ;;  %v5677_v59 = vld [vmem:[%s8227_s3 + $0x78] sm:$0xff] }
 0x9c8   :  { %v6612_v50 = vpack.c.bf16 %v5677_v59, %v5676_v30  ;;  %v5729_v30 = vld [vmem:[%s8227_s3 + $0xa8] sm:$0xff] }
 0x9ca   :  { %6614 = vmatprep.subr.msk.bf16.mxu1 %vm7784_vm5, %v6612_v50 }
 0x9cb   :  { %6617 = vmatpush3.bf16.xpose.msk.msra.mxu1 %vm7784_vm5, %v6612_v50  ;;  %v5766_v50 = vld [vmem:[%s8227_s3 + $0xd0] sm:$0xff] }
 0x9cc   :  { %6620 = vmatprep.subr.msk.bf16.mxu1 %vm7784_vm5, %v6618_v46  ;;  %v6672_v51 = vpack.c.bf16 %v5767_v38, %v5766_v50 }
 0xa0a   :  { %v4372_v32 = vpop.xlane.xlu0 %4371 }
 0xa0b   :  { %6848 = vrcp.f32 %v4372_v32 }
 0xa0e   :  { %v4375_v29 = vpop.xlane.xlu1 %4374 }
 0xa0f   :  { %6850 = vrcp.f32 %v4375_v29 }
 0xa12   :  { %v4378_v43 = vpop.xlane.xlu0 %4377  ;;  %v4629_v13 = vpop.permute.xlu1 %4628 }
 0xa13   :  { %6852 = vrcp.f32 %v4378_v43 }
 0xa15   :  { %v6849_v56 = vpop.eup %6848 }
 0xa16   :  { %v4389_v60 = vmul.f32 %v6849_v56, %v7738_v28  ;;  %v4381_v63 = vpop.xlane.xlu0 %4380 }
 0xa17   :  { %6854 = vrcp.f32 %v4381_v63 }
 0xa18   :  { %6396 = vmatmul.mubr.msk.f32.vlgmr.msra.gmra.mrb[76].mxu0 %vm932_vm4, %v4389_v60 }
 0xa19   :  { %v6851_v6 = vpop.eup %6850  ;;  %6399 = vmatpush3.msra.mxu0 %v4477_v53  ;;  %6400 = vmatprep.mubr.msk.f32.mxu0 %vm6915_vm2, %v6914_v0  ;;  %v5769_v53 = vld [vmem:[%s8227_s3 + $0xe8] sm:$0xff] }
 0xa1a   :  { %v4391_v8 = vmul.f32 %v6851_v6, %v7742_v54  ;;  %v4384_v9 = vpop.xlane.xlu0 %4383  ;;  %6403 = vmatprep.subr.mxu0 %v6914_v0 }
 0xa1b   :  { %6856 = vrcp.f32 %v4384_v9 }
 0xa1c   :  { %6401 = vmatmul.mubr.msk.f32.vlgmr.msra.gmra.mrb[78].mxu0 %vm932_vm4, %v4391_v8 }
 0xa1d   :  { %v6853_v12 = vpop.eup %6852  ;;  %6404 = vmatpush3.msra.mxu0 %v4553_v57  ;;  %6405 = vmatprep.mubr.msk.f32.mxu0 %vm6915_vm2, %v6914_v0 }
 0xa1e   :  { %v4393_v28 = vmul.f32 %v6853_v12, %v7746_v11  ;;  %6408 = vmatprep.subr.mxu0 %v6914_v0  ;;  %v4705_v15 = vpop.permute.xlu0 %4704  ;;  %v5786_v12 = vld [vmem:[%s8228_s4] ss:$0 sm:$0xff] }
 0xa20   :  { %6406 = vmatmul.mubr.msk.f32.vlgmr.msra.gmra.mrb[80].mxu0 %vm932_vm4, %v4393_v28 }
 0xa21   :  { %v6855_v14 = vpop.eup %6854  ;;  %6409 = vmatpush3.msra.mxu0 %v4629_v13  ;;  %6410 = vmatprep.mubr.msk.f32.mxu0 %vm6915_vm2, %v6914_v0 }
 0xa22   :  { %v4395_v54 = vmul.f32 %v6855_v14, %v7753_v16  ;;  %6413 = vmatprep.subr.mxu0 %v6914_v0 }
 0xa24   :  { %6411 = vmatmul.mubr.msk.f32.vlgmr.msra.gmra.mrb[82].mxu0 %vm932_vm4, %v4395_v54 }
 0xa25   :  { %v6857_v49 = vpop.eup %6856  ;;  %6414 = vmatpush3.msra.mxu0 %v4705_v15  ;;  %6415 = vmatprep.mubr.msk.f32.mxu0 %vm6915_vm2, %v6914_v0  ;;  %v6884_v15 = vld [vmem:[%s8224_s0 + $0x8] sm:$0xff] }
 0xa26   :  { %v4397_v11 = vmul.f32 %v6857_v49, %v7763_v19  ;;  %6418 = vmatprep.subr.mxu0 %v6914_v0  ;;  %v1439_v19 = vld [vmem:[%s8227_s3 + $0x10] sm:$0xff] }
 0xa27   :  { %v6624_v21 = vpack.c.bf16 %v1440_v34, %v1439_v19 }
 0xa28   :  { %6416 = vmatmul.mubr.msk.f32.vlgmr.msra.gmra.mrb[84].mxu0 %vm932_vm4, %v4397_v11  ;;  %v6885_v11 = vld [vmem:[%s8224_s0] sm:$0xff] }
 0xa29   :  { %6420 = vmatprep.mubr.msk.f32.mxu0 %vm6915_vm2, %v6914_v0 }
 0xa43   :  { %v4387_v16 = vpop.xlane.xlu1 %4386 }
 0xa44   :  { %6858 = vrcp.f32 %v4387_v16 }
 0xa47   :  { %v4781_v17 = vpop.permute.xlu1 %4780 }
 0xa48   :  { %6419 = vmatpush3.msra.mxu0 %v4781_v17 }
 0xa4e   :  { %v6859_v18 = vpop.eup %6858 }
 0xa4f   :  { %v4399_v48 = vmul.f32 %v6859_v18, %v7800_v37 }
 0xa51   :  { %6421 = vmatmul.mubr.msk.f32.vlgmr.msra.gmra.mrb[86].mxu0 %vm932_vm4, %v4399_v48 }
 0xa59   :  { %v2052_v20 = vpop.f32.mrb[20].mxu1 }
 0xa5a   :  { %v6202_v0 = vpop.f32.mrb[21].mxu1  ;;  %6244 = vmatprep.mubr.msk.f32.mxu1 %vm475_vm3, %v2052_v20 }
 0xa5b   :  { %6245 = vmatmul.mubr.msk.f32.vlgmr.msra.gmra.mrb[26].mxu1 %vm475_vm3, %v7504_v10  ;;  %v1442_v10 = vld [vmem:[%s8227_s3 + $0x28] sm:$0xff] }
 0xa5c   :  { %6623 = vmatpush3.bf16.xpose.msk.msra.mxu1 %vm7784_vm5, %v6618_v46  ;;  %v6630_v55 = vpack.c.bf16 %v1442_v10, %v1441_v36  ;;  %v5768_v46 = vld [vmem:[%s8227_s3 + $0xe0] sm:$0xff] }
 0xa5d   :  { %v2206_v31 = vpop.f32.mrb[22].mxu1  ;;  %6626 = vmatprep.subr.msk.bf16.mxu1 %vm7784_vm5, %v6624_v21 }
 0xa5e   :  { %v6212_v24 = vpop.f32.mrb[23].mxu1  ;;  %6247 = vmatprep.mubr.msk.f32.mxu1 %vm475_vm3, %v2206_v31  ;;  %v6887_v31 = vld [vmem:[%s8224_s0 + $0x10] sm:$0xff] }
 0xa5f   :  { %6248 = vmatmul.mubr.msk.f32.gmra.mrb[28].mxu1 %vm475_vm3, %v7506_v58  ;;  %v1443_v58 = vld [vmem:[%s8227_s3 + $0x30] sm:$0xff] }
 0xa60   :  { %v6636_v27 = vpack.c.bf16 %v1444_v25, %v1443_v58  ;;  %v6888_v25 = vld [vmem:[%s8224_s0 + $0x28] sm:$0xff] }
 0xa62   :  { %v2360_v23 = vpop.f32.mrb[24].mxu1 }
 0xa63   :  { %v6222_v61 = vpop.f32.mrb[25].mxu1  ;;  %6250 = vmatprep.mubr.msk.f32.mxu1 %vm475_vm3, %v2360_v23 }
 0xa64   :  { %6251 = vmatmul.mubr.msk.f32.gmra.mrb[30].mxu1 %vm475_vm3, %v7508_v2  ;;  %v5724_v2 = vld [vmem:[%s8227_s3 + $0x80] sm:$0xff] }
 0xa65   :  { %6629 = vmatpush3.bf16.xpose.msk.msra.mxu1 %vm7784_vm5, %v6624_v21  ;;  %6269 = vmatprep.mubr.msk.f32.mxu1 %vm475_vm3, %v7575_v22  ;;  %v5725_v22 = vld [vmem:[%s8227_s3 + $0x88] sm:$0xff]  ;;  %v6886_v21 = vld [vmem:[%s8224_s0 + $0x18] sm:$0xff] }
 0xa66   :  { %6632 = vmatprep.subr.msk.bf16.mxu1 %vm7784_vm5, %v6630_v55  ;;  %v6642_v37 = vpack.c.bf16 %v5725_v22, %v5724_v2  ;;  %v6889_v2 = vld [vmem:[%s8224_s0 + $0x20] sm:$0xff] }
 0xa6d   :  { %6635 = vmatpush3.bf16.xpose.msk.msra.mxu1 %vm7784_vm5, %v6630_v55 }
 0xa6e   :  { %6638 = vmatprep.subr.msk.bf16.mxu1 %vm7784_vm5, %v6636_v27 }
 0xa75   :  { %6641 = vmatpush3.bf16.xpose.msk.msra.mxu1 %vm7784_vm5, %v6636_v27 }
 0xa76   :  { %6644 = vmatprep.subr.msk.bf16.mxu1 %vm7784_vm5, %v6642_v37 }
 0xa7c   :  { %6270 = vmatmul.mubr.msk.f32.vlgmr.msra.gmra.mrb[26].mxu1 %vm475_vm3, %v7385_v1  ;;  %v6654_v1 = vpack.c.bf16 %v5729_v30, %v5728_v26  ;;  %v5134_v26 = vld [vmem:[%s8231_s7 + $0x10] sm:$0xff] }
 0xa7d   :  { %6272 = vmatprep.mubr.msk.f32.mxu1 %vm475_vm3, %v7583_v33  ;;  %6647 = vmatpush3.bf16.xpose.msk.msra.mxu1 %vm7784_vm5, %v6642_v37  ;;  %v5731_v33 = vld [vmem:[%s8227_s3 + $0xb8] sm:$0xff] }
 0xa7e   :  { %6650 = vmatprep.subr.msk.bf16.mxu1 %vm7784_vm5, %v6648_v5 }
 0xa80   :  { %6273 = vmatmul.mubr.msk.f32.gmra.mrb[28].mxu1 %vm475_vm3, %v7387_v3  ;;  %v5730_v3 = vld [vmem:[%s8227_s3 + $0xb0] sm:$0xff] }
 0xa81   :  { %6275 = vmatprep.mubr.msk.f32.mxu1 %vm475_vm3, %v7585_v40  ;;  %v6660_v40 = vpack.c.bf16 %v5731_v33, %v5730_v3 }
 0xa84   :  { %6276 = vmatmul.mubr.msk.f32.gmra.mrb[30].mxu1 %vm475_vm3, %v7389_v7  ;;  %v5764_v7 = vld [vmem:[%s8227_s3 + $0xc0] sm:$0xff] }
 0xa85   :  { %6653 = vmatpush3.bf16.xpose.msk.msra.mxu1 %vm7784_vm5, %v6648_v5  ;;  %6354 = vmatprep.mubr.msk.f32.mxu1 %vm475_vm3, %v7700_v42  ;;  %v5765_v42 = vld [vmem:[%s8227_s3 + $0xc8] sm:$0xff] }
 0xa86   :  { %6656 = vmatprep.subr.msk.bf16.mxu1 %vm7784_vm5, %v6654_v1  ;;  %v6666_v59 = vpack.c.bf16 %v5765_v42, %v5764_v7  ;;  %v5133_v5 = vld [vmem:[%s8231_s7 + $0x8] sm:$0xff] }
 0xa87   :  { %v6690_v30 = vpack.c.bf16 %v5133_v5, %v5132_v45 }
 0xa89   :  { %6692 = vmatprep.subr.msk.bf16.mxu0 %vm7003_vm1, %v6690_v30 }
 0xa8a   :  { %6695 = vmatpush3.bf16.xpose.msk.msra.mxu0 %vm7003_vm1, %v6690_v30 }
 0xa8d   :  { %6659 = vmatpush3.bf16.xpose.msk.msra.mxu1 %vm7784_vm5, %v6654_v1  ;;  %v5135_v1 = vld [vmem:[%s8231_s7 + $0x18] sm:$0xff] }
 0xa8e   :  { %6662 = vmatprep.subr.msk.bf16.mxu1 %vm7784_vm5, %v6660_v40  ;;  %v6696_v3 = vpack.c.bf16 %v5135_v1, %v5134_v26 }
 0xa90   :  { %6698 = vmatprep.subr.msk.bf16.mxu0 %vm7003_vm1, %v6696_v3 }
 0xa92   :  { %6701 = vmatpush3.bf16.xpose.msk.msra.mxu0 %vm7003_vm1, %v6696_v3 }
 0xa95   :  { %6665 = vmatpush3.bf16.xpose.msk.msra.mxu1 %vm7784_vm5, %v6660_v40 }
 0xa96   :  { %6668 = vmatprep.subr.msk.bf16.mxu1 %vm7784_vm5, %v6666_v59 }
 0xa9c   :  { %6355 = vmatmul.mubr.msk.f32.vlgmr.msra.gmra.mrb[26].mxu1 %vm475_vm3, %v7702_v41  ;;  %v6678_v41 = vpack.c.bf16 %v5769_v53, %v5768_v46 }
 0xa9d   :  { %6357 = vmatprep.mubr.msk.f32.mxu1 %vm475_vm3, %v7704_v52  ;;  %6671 = vmatpush3.bf16.xpose.msk.msra.mxu1 %vm7784_vm5, %v6666_v59  ;;  %v5770_v52 = vld [vmem:[%s8227_s3 + $0xf0] sm:$0xff] }
 0xa9e   :  { %6674 = vmatprep.subr.msk.bf16.mxu1 %vm7784_vm5, %v6672_v51 }
 0xaa0   :  { %6358 = vmatmul.mubr.msk.f32.gmra.mrb[28].mxu1 %vm475_vm3, %v7706_v35  ;;  %v5771_v35 = vld [vmem:[%s8227_s3 + $0xf8] sm:$0xff] }
 0xaa1   :  { %6360 = vmatprep.mubr.msk.f32.mxu1 %vm475_vm3, %v7708_v39  ;;  %v6684_v57 = vpack.c.bf16 %v5771_v35, %v5770_v52 }
 0xaa4   :  { %6361 = vmatmul.mubr.msk.f32.gmra.mrb[30].mxu1 %vm475_vm3, %v7710_v47 }
 0xaa5   :  { %6677 = vmatpush3.bf16.xpose.msk.msra.mxu1 %vm7784_vm5, %v6672_v51 }
 0xaa6   :  { %6680 = vmatprep.subr.msk.bf16.mxu1 %vm7784_vm5, %v6678_v41 }
 0xaad   :  { %6683 = vmatpush3.bf16.xpose.msk.msra.mxu1 %vm7784_vm5, %v6678_v41 }
 0xaae   :  { %6686 = vmatprep.subr.msk.bf16.mxu1 %vm7784_vm5, %v6684_v57 }
 0xab5   :  { %6689 = vmatpush3.bf16.xpose.msk.msra.mxu1 %vm7784_vm5, %v6684_v57 }
 0xaeb   :  { %v4472_v39 = vpop.f32.mrb[76].mxu0 }
 0xaec   :  { %v6397_v47 = vpop.f32.mrb[77].mxu0  ;;  %6439 = vmatprep.mubr.msk.f32.mxu1 %vm475_vm3, %v4472_v39 }
 0xaef   :  { %v4548_v32 = vpop.f32.mrb[78].mxu0 }
 0xaf0   :  { %v6402_v29 = vpop.f32.mrb[79].mxu0  ;;  %6440 = vmatmul.mubr.msk.f32.vlgmr.msra.gmra.mrb[26].mxu1 %vm475_vm3, %v4548_v32 }
 0xaf3   :  { %v4624_v43 = vpop.f32.mrb[80].mxu0 }
 0xaf4   :  { %v6407_v56 = vpop.f32.mrb[81].mxu0  ;;  %6442 = vmatprep.mubr.msk.f32.mxu1 %vm475_vm3, %v4624_v43 }
 0xaf7   :  { %v4700_v60 = vpop.f32.mrb[82].mxu0 }
 0xaf8   :  { %v6412_v63 = vpop.f32.mrb[83].mxu0  ;;  %6443 = vmatmul.mubr.msk.f32.gmra.mrb[28].mxu1 %vm475_vm3, %v4700_v60  ;;  %v5136_v60 = vld [vmem:[%s8231_s7 + $0x20] sm:$0xff] }
 0xaf9   :  { %v5137_v63 = vld [vmem:[%s8231_s7 + $0x28] sm:$0xff] }
 0xafb   :  { %v4776_v6 = vpop.f32.mrb[84].mxu0 }
 0xafc   :  { %v6417_v8 = vpop.f32.mrb[85].mxu0  ;;  %6445 = vmatprep.mubr.msk.f32.mxu1 %vm475_vm3, %v4776_v6  ;;  %v6702_v6 = vpack.c.bf16 %v5137_v63, %v5136_v60 }
 0xafd   :  { %v5138_v8 = vld [vmem:[%s8231_s7 + $0x30] sm:$0xff] }
 0xafe   :  { %6704 = vmatprep.subr.msk.bf16.mxu0 %vm7003_vm1, %v6702_v6 }
 0xaff   :  { %6707 = vmatpush3.bf16.xpose.msk.msra.mxu0 %vm7003_vm1, %v6702_v6 }
 0xb24   :  { %v4852_v44 = vpop.f32.mrb[86].mxu0 }
 0xb25   :  { %v6422_v9 = vpop.f32.mrb[87].mxu0  ;;  %6446 = vmatmul.mubr.msk.f32.gmra.mrb[30].mxu1 %vm475_vm3, %v4852_v44  ;;  %v5139_v44 = vld [vmem:[%s8231_s7 + $0x38] sm:$0xff] }
 0xb26   :  { %v6708_v9 = vpack.c.bf16 %v5139_v44, %v5138_v8 }
 0xb28   :  { %6710 = vmatprep.subr.msk.bf16.mxu0 %vm7003_vm1, %v6708_v9 }
 0xb29   :  { %6713 = vmatpush3.bf16.xpose.msk.msra.mxu0 %vm7003_vm1, %v6708_v9 }
 0xbc3   :  { %v6441_v28 = vpop.f32.mrb[26].mxu1 }
 0xbc4   :  { %v5016_v13 = vadd.f32 %v6441_v28, %v5786_v12  ;;  %v4973_v14 = vpop.f32.mrb[27].mxu1 }
 0xbc5   :  { %v5015_v54 = vadd.f32 %v5786_v12, %v4973_v14 }
 0xbc6   :  { %v5022_v49 = vadd.f32 %v6884_v15, %v5016_v13 }
 0xbc7   :  { %v5021_v16 = vadd.f32 %v6885_v11, %v5015_v54 }
 0xbc8   :  { %v5032_v17 = vsel %vm116_vm0, %v5022_v49, 0.0 }
 0xbc9   :  { %5033 = vadd.xlane.f32.xlu1 %v5032_v17  ;;  %v5029_v18 = vsel %vm116_vm0, %v5021_v16, 0.0 }
 0xbca   :  { %5030 = vadd.xlane.f32.xlu0 %v5029_v18  ;;  %v5290_v18 = vld [vmem:[%s8233_s9] sm:$0xff] }
 0xbcb   :  { %v6444_v48 = vpop.f32.mrb[28].mxu1 }
 0xbcc   :  { %v5018_v19 = vadd.f32 %v6444_v48, %v5786_v12  ;;  %v4983_v34 = vpop.f32.mrb[29].mxu1  ;;  %v5291_v48 = vld [vmem:[%s8233_s9 + $0x8] sm:$0xff] }
 0xbcd   :  { %v5017_v20 = vadd.f32 %v5786_v12, %v4983_v34  ;;  %v6714_v34 = vpack.c.bf16 %v5291_v48, %v5290_v18 }
 0xbce   :  { %v5024_v0 = vadd.f32 %v6886_v21, %v5018_v19  ;;  %v5292_v19 = vld [vmem:[%s8233_s9 + $0x10] sm:$0xff] }
 0xbcf   :  { %v5023_v24 = vadd.f32 %v6887_v31, %v5017_v20  ;;  %v5293_v20 = vld [vmem:[%s8233_s9 + $0x18] sm:$0xff]  ;;  %6716 = vmatprep.subr.msk.bf16.mxu1 %vm7003_vm1, %v6714_v34  ;;  %v5295_v31 = vld [vmem:[%s8233_s9 + $0x28] sm:$0xff] }
 0xbd0   :  { %v5038_v36 = vsel %vm116_vm0, %v5024_v0, 0.0  ;;  %v6720_v21 = vpack.c.bf16 %v5293_v20, %v5292_v19  ;;  %6719 = vmatpush3.bf16.xpose.msk.msra.mxu1 %vm7003_vm1, %v6714_v34 }
 0xbd1   :  { %5039 = vadd.xlane.f32.xlu0 %v5038_v36  ;;  %v5035_v10 = vsel %vm116_vm0, %v5023_v24, 0.0  ;;  %v5296_v36 = vld [vmem:[%s8233_s9 + $0x30] sm:$0xff] }
 0xbd2   :  { %6722 = vmatprep.subr.msk.bf16.mxu1 %vm7003_vm1, %v6720_v21 }
 0xbd5   :  { %5036 = vadd.xlane.f32.xlu0 %v5035_v10  ;;  %v5297_v10 = vld [vmem:[%s8233_s9 + $0x38] sm:$0xff] }
 0xbd8   :  { %6725 = vmatpush3.bf16.xpose.msk.msra.mxu1 %vm7003_vm1, %v6720_v21 }
 0xbf8   :  { %v6447_v23 = vpop.f32.mrb[30].mxu1 }
 0xbf9   :  { %v5020_v55 = vadd.f32 %v6447_v23, %v5786_v12  ;;  %v4993_v61 = vpop.f32.mrb[31].mxu1  ;;  %v6732_v23 = vpack.c.bf16 %v5297_v10, %v5296_v36 }
 0xbfa   :  { %v5019_v58 = vadd.f32 %v5786_v12, %v4993_v61 }
 0xbfb   :  { %v5026_v27 = vadd.f32 %v6888_v25, %v5020_v55 }
 0xbfc   :  { %v5025_v22 = vadd.f32 %v6889_v2, %v5019_v58 }
 0xbfd   :  { %v5044_v37 = vsel %vm116_vm0, %v5026_v27, 0.0 }
 0xbfe   :  { %5045 = vadd.xlane.f32.xlu1 %v5044_v37  ;;  %v5041_v62 = vsel %vm116_vm0, %v5025_v22, 0.0 }
 0xbff   :  { %5042 = vadd.xlane.f32.xlu0 %v5041_v62 }
 0xc56   :  { %v5034_v33 = vpop.xlane.xlu1 %5033 }
 0xc57   :  { %v5049_v40 = vmul.f32 0.015625, %v5034_v33  ;;  %v5031_v7 = vpop.xlane.xlu0 %5030 }
 0xc58   :  { %v5048_v42 = vmul.f32 0.015625, %v5031_v7 }
 0xc59   :  { %v8060_v59 = vsub.f32 %v5022_v49, %v5049_v40  ;;  %v5788_v40 = vld [vmem:[%s8230_s6] ss:$0 sm:$0xff] }
 0xc5a   :  { %v8062_v50 = vsub.f32 %v5021_v16, %v5048_v42 }
 0xc5b   :  { %v5061_v38 = vmul.f32 %v8060_v59, %v8060_v59 }
 0xc5c   :  { %v5060_v51 = vmul.f32 %v8062_v50, %v8062_v50 }
 0xc5d   :  { %v5069_v46 = vsel %vm116_vm0, %v5061_v38, 0.0 }
 0xc5e   :  { %v5040_v53 = vpop.xlane.xlu0 %5039  ;;  %5070 = vadd.xlane.f32.xlu1 %v5069_v46  ;;  %v5066_v41 = vsel %vm116_vm0, %v5060_v51, 0.0 }
 0xc5f   :  { %v5051_v52 = vmul.f32 0.015625, %v5040_v53  ;;  %5067 = vadd.xlane.f32.xlu0 %v5066_v41 }
 0xc61   :  { %v8070_v35 = vsub.f32 %v5024_v0, %v5051_v52  ;;  %v5294_v0 = vld [vmem:[%s8233_s9 + $0x20] sm:$0xff] }
 0xc62   :  { %v5037_v57 = vpop.xlane.xlu0 %5036 }
 0xc63   :  { %v5050_v39 = vmul.f32 0.015625, %v5037_v57  ;;  %v5063_v47 = vmul.f32 %v8070_v35, %v8070_v35 }
 0xc65   :  { %v8074_v32 = vsub.f32 %v5023_v24, %v5050_v39  ;;  %v5075_v29 = vsel %vm116_vm0, %v5063_v47, 0.0  ;;  %v6726_v24 = vpack.c.bf16 %v5295_v31, %v5294_v0 }
 0xc66   :  { %5076 = vadd.xlane.f32.xlu1 %v5075_v29 }
 0xc67   :  { %v5062_v43 = vmul.f32 %v8074_v32, %v8074_v32  ;;  %6728 = vmatprep.subr.msk.bf16.mxu1 %vm7003_vm1, %v6726_v24 }
 0xc68   :  { %6731 = vmatpush3.bf16.xpose.msk.msra.mxu1 %vm7003_vm1, %v6726_v24 }
 0xc69   :  { %v5072_v56 = vsel %vm116_vm0, %v5062_v43, 0.0  ;;  %6734 = vmatprep.subr.msk.bf16.mxu1 %vm7003_vm1, %v6732_v23 }
 0xc6a   :  { %5073 = vadd.xlane.f32.xlu0 %v5072_v56 }
 0xc70   :  { %6737 = vmatpush3.bf16.xpose.msk.msra.mxu1 %vm7003_vm1, %v6732_v23  ;;  %v5804_v23 = vld [vmem:[%s8234_s10] ss:$0 sm:$0xff] }
 0xc8b   :  { %v5046_v12 = vpop.xlane.xlu1 %5045 }
 0xc8c   :  { %v5053_v28 = vmul.f32 0.015625, %v5046_v12  ;;  %v5043_v13 = vpop.xlane.xlu0 %5042 }
 0xc8d   :  { %v5052_v14 = vmul.f32 0.015625, %v5043_v13  ;;  %v5789_v13 = vld [vmem:[%s8232_s8] ss:$0 sm:$0xff] }
 0xc8e   :  { %v8100_v54 = vsub.f32 %v5026_v27, %v5053_v28 }
 0xc8f   :  { %v8102_v15 = vsub.f32 %v5025_v22, %v5052_v14 }
 0xc90   :  { %v5065_v49 = vmul.f32 %v8100_v54, %v8100_v54 }
 0xc91   :  { %v5064_v11 = vmul.f32 %v8102_v15, %v8102_v15 }
 0xc92   :  { %v5081_v16 = vsel %vm116_vm0, %v5065_v49, 0.0 }
 0xc93   :  { %5082 = vadd.xlane.f32.xlu1 %v5081_v16  ;;  %v5078_v17 = vsel %vm116_vm0, %v5064_v11, 0.0 }
 0xc94   :  { %5079 = vadd.xlane.f32.xlu0 %v5078_v17 }
 0xceb   :  { %v5071_v55 = vpop.xlane.xlu1 %5070 }
 0xcec   :  { %v5085_v61 = vmul.f32 0.015625, %v5071_v55  ;;  %v5068_v58 = vpop.xlane.xlu0 %5067 }
 0xced   :  { %v5084_v25 = vmul.f32 0.015625, %v5068_v58 }
 0xcee   :  { %v5091_v27 = vadd.f32 1e-05, %v5085_v61 }
 0xcef   :  { %v5090_v2 = vadd.f32 1e-05, %v5084_v25 }
 0xcf0   :  { %6860 = vrsqrt.f32 %v5091_v27 }
 0xcf1   :  { %6862 = vrsqrt.f32 %v5090_v2 }
 0xcf3   :  { %v5077_v22 = vpop.xlane.xlu1 %5076 }
 0xcf4   :  { %v5087_v37 = vmul.f32 0.015625, %v5077_v22 }
 0xcf6   :  { %v5093_v62 = vadd.f32 1e-05, %v5087_v37 }
 0xcf7   :  { %v5074_v45 = vpop.xlane.xlu0 %5073 }
 0xcf8   :  { %6864 = vrsqrt.f32 %v5093_v62  ;;  %v5086_v5 = vmul.f32 0.015625, %v5074_v45 }
 0xcfa   :  { %v6861_v26 = vpop.eup %6860  ;;  %v5092_v30 = vadd.f32 1e-05, %v5086_v5 }
 0xcfb   :  { %v6863_v1 = vpop.eup %6862  ;;  %v5103_v3 = vmul.f32 %v6861_v26, %v8060_v59 }
 0xcfc   :  { %6866 = vrsqrt.f32 %v5092_v30  ;;  %v5102_v33 = vmul.f32 %v6863_v1, %v8062_v50 }
 0xcfd   :  { %v5115_v7 = vmul.f32 %v5787_v4, %v5103_v3 }
 0xcfe   :  { %v5114_v42 = vmul.f32 %v5787_v4, %v5102_v33 }
 0xcff   :  { %v5127_v51 = vadd.f32 %v5788_v40, %v5115_v7 }
 0xd00   :  { %v8158_v38 = vadd.f32 %v5788_v40, %v5114_v42 }
 0xd02   :  { %v6865_v46 = vpop.eup %6864  ;;  %6464 = vmatprep.mubr.msk.f32.mxu0 %vm116_vm0, %v8158_v38 }
 0xd03   :  { %6465 = vmatmul.mubr.msk.f32.vlgmr.msra.gmra.mrb[88].mxu0 %vm116_vm0, %v5127_v51  ;;  %v5105_v59 = vmul.f32 %v6865_v46, %v8070_v35 }
 0xd05   :  { %v5117_v41 = vmul.f32 %v5787_v4, %v5105_v59 }
 0xd06   :  { %v6867_v53 = vpop.eup %6866 }
 0xd07   :  { %v5104_v50 = vmul.f32 %v6867_v53, %v8074_v32  ;;  %v5129_v39 = vadd.f32 %v5788_v40, %v5117_v41 }
 0xd09   :  { %v5116_v52 = vmul.f32 %v5787_v4, %v5104_v50 }
 0xd0b   :  { %v8165_v57 = vadd.f32 %v5788_v40, %v5116_v52 }
 0xd0d   :  { %6467 = vmatprep.mubr.msk.f32.mxu0 %vm116_vm0, %v8165_v57 }
 0xd0e   :  { %6468 = vmatmul.mubr.msk.f32.gmra.mrb[90].mxu0 %vm116_vm0, %v5129_v39 }
 0xd20   :  { %v5083_v47 = vpop.xlane.xlu1 %5082 }
 0xd21   :  { %v5089_v29 = vmul.f32 0.015625, %v5083_v47  ;;  %v5080_v43 = vpop.xlane.xlu0 %5079 }
 0xd22   :  { %v5088_v56 = vmul.f32 0.015625, %v5080_v43 }
 0xd23   :  { %v5095_v60 = vadd.f32 1e-05, %v5089_v29 }
 0xd24   :  { %v5094_v63 = vadd.f32 1e-05, %v5088_v56 }
 0xd25   :  { %6868 = vrsqrt.f32 %v5095_v60 }
 0xd26   :  { %6870 = vrsqrt.f32 %v5094_v63 }
 0xd2f   :  { %v6869_v35 = vpop.eup %6868 }
 0xd30   :  { %v6871_v32 = vpop.eup %6870  ;;  %v5107_v6 = vmul.f32 %v6869_v35, %v8100_v54 }
 0xd31   :  { %v5106_v8 = vmul.f32 %v6871_v32, %v8102_v15 }
 0xd32   :  { %v5119_v44 = vmul.f32 %v5787_v4, %v5107_v6 }
 0xd33   :  { %v5118_v9 = vmul.f32 %v5787_v4, %v5106_v8 }
 0xd34   :  { %v5131_v28 = vadd.f32 %v5788_v40, %v5119_v44 }
 0xd35   :  { %v5130_v12 = vadd.f32 %v5788_v40, %v5118_v9 }
 0xd37   :  { %6470 = vmatprep.mubr.msk.f32.mxu0 %vm116_vm0, %v5130_v12 }
 0xd38   :  { %6471 = vmatmul.mubr.msk.f32.gmra.mrb[92].mxu0 %vm116_vm0, %v5131_v28 }
 0xdd6   :  { %v6466_v14 = vpop.f32.mrb[88].mxu0 }
 0xdd7   :  { %v5261_v49 = vadd.f32 %v6466_v14, %v5789_v13  ;;  %v5255_v11 = vpop.f32.mrb[89].mxu0 }
 0xdd8   :  { %v5256_v16 = vadd.f32 %v5789_v13, %v5255_v11 }
 0xdd9   :  { %v5285_v54 = vmax.f32 %v5261_v49, 0.0 }
 0xdda   :  { %v5284_v17 = vmax.f32 %v5256_v16, 0.0 }
 0xddc   :  { %6489 = vmatprep.mubr.msk.f32.mxu1 %vm116_vm0, %v5284_v17 }
 0xddd   :  { %6490 = vmatmul.mubr.msk.f32.vlgmr.msra.gmra.mrb[32].mxu1 %vm116_vm0, %v5285_v54 }
 0xde1   :  { %v6469_v15 = vpop.f32.mrb[90].mxu0 }
 0xde2   :  { %v5271_v18 = vadd.f32 %v6469_v15, %v5789_v13  ;;  %v5265_v48 = vpop.f32.mrb[91].mxu0 }
 0xde3   :  { %v5266_v19 = vadd.f32 %v5789_v13, %v5265_v48 }
 0xde4   :  { %v5287_v20 = vmax.f32 %v5271_v18, 0.0 }
 0xde5   :  { %v5286_v34 = vmax.f32 %v5266_v19, 0.0 }
 0xde7   :  { %6492 = vmatprep.mubr.msk.f32.mxu1 %vm116_vm0, %v5286_v34 }
 0xde8   :  { %6493 = vmatmul.mubr.msk.f32.gmra.mrb[34].mxu1 %vm116_vm0, %v5287_v20 }
 0xe0b   :  { %v6472_v21 = vpop.f32.mrb[92].mxu0 }
 0xe0c   :  { %v5281_v0 = vadd.f32 %v6472_v21, %v5789_v13  ;;  %v5275_v31 = vpop.f32.mrb[93].mxu0 }
 0xe0d   :  { %v5276_v24 = vadd.f32 %v5789_v13, %v5275_v31 }
 0xe0e   :  { %v5289_v10 = vmax.f32 %v5281_v0, 0.0 }
 0xe0f   :  { %v5288_v36 = vmax.f32 %v5276_v24, 0.0 }
 0xe11   :  { %6495 = vmatprep.mubr.msk.f32.mxu1 %vm116_vm0, %v5288_v36 }
 0xe12   :  { %6496 = vmatmul.mubr.msk.f32.gmra.mrb[36].mxu1 %vm116_vm0, %v5289_v10 }
 0xeb0   :  { %v6491_v55 = vpop.f32.mrb[32].mxu1 }
 0xeb1   :  { %v5419_v61 = vadd.f32 %v6491_v55, %v5804_v23  ;;  %v5413_v58 = vpop.f32.mrb[33].mxu1 }
 0xeb2   :  { %v5414_v25 = vadd.f32 %v5804_v23, %v5413_v58  ;;  %v5819_v58 = vld [vmem:[%s8235_s11] ss:$0 sm:$0xff]  ;;  %s6919_s11 = smov [#allocation2]  }
 0xeb3   :  { %v5443_v27 = vadd.f32 %v5419_v61, %v5127_v51 }
 0xeb4   :  { %v5442_v2 = vadd.f32 %v5414_v25, %v8158_v38 }
 0xeb5   :  { %v5453_v22 = vsel %vm116_vm0, %v5443_v27, 0.0 }
 0xeb6   :  { %5454 = vadd.xlane.f32.xlu1 %v5453_v22  ;;  %v5450_v37 = vsel %vm116_vm0, %v5442_v2, 0.0  ;;  %v5820_v22 = vld [vmem:[%s8236_s12] ss:$0 sm:$0xff]  ;;  %s5563_s12 = sshll.u32 %s6919_s11, 4  ;;  %s5564_s12 = int_to_ptr.vmem [resolvable:$true] %s5563_s12 }
 0xeb7   :  { %5451 = vadd.xlane.f32.xlu0 %v5450_v37  ;;  %s6890_s7 = scalar_lea.vmem %s5564_s12, 768  ;;  %p6895_p1 = scmp.lt.s32.totalorder %s5564_s12, %s5564_s12 }
 0xeb8   :  { %p6891_p0 = scmp.ne.s32.totalorder %s5564_s12, %s6890_s7  ;;  %p6896_p2 = scmp.lt.s32.totalorder %s6890_s7, %s6890_s7 }
 0xeba   :  { %p6897_p3 = por %p6896_p2, %p6895_p1 }
 0xebb   :  { %v6494_v62 = vpop.f32.mrb[34].mxu1 }
 0xebc   :  { %v5429_v45 = vadd.f32 %v6494_v62, %v5804_v23  ;;  %v5423_v5 = vpop.f32.mrb[35].mxu1  ;;  %p6898_p4 = pnand %p6897_p3, %p6891_p0 }
 0xebd   :  { %v5424_v26 = vadd.f32 %v5804_v23, %v5423_v5 }
 0xebe   :  { %v5445_v30 = vadd.f32 %v5429_v45, %v5129_v39 }
 0xebf   :  { %v5444_v4 = vadd.f32 %v5424_v26, %v8165_v57 }
 0xec0   :  { %v5459_v1 = vsel %vm116_vm0, %v5445_v30, 0.0 }
 0xec1   :  { %5460 = vadd.xlane.f32.xlu1 %v5459_v1  ;;  %v5456_v3 = vsel %vm116_vm0, %v5444_v4, 0.0 }
 0xec2   :  { %5457 = vadd.xlane.f32.xlu0 %v5456_v3 }
 0xee5   :  { %v6497_v33 = vpop.f32.mrb[36].mxu1 }
 0xee6   :  { %v5439_v40 = vadd.f32 %v6497_v33, %v5804_v23  ;;  %v5433_v7 = vpop.f32.mrb[37].mxu1 }
 0xee7   :  { %v5434_v42 = vadd.f32 %v5804_v23, %v5433_v7 }
 0xee8   :  { %v5447_v38 = vadd.f32 %v5439_v40, %v5131_v28 }
 0xee9   :  { %v5446_v51 = vadd.f32 %v5434_v42, %v5130_v12 }
 0xeea   :  { %v5465_v46 = vsel %vm116_vm0, %v5447_v38, 0.0 }
 0xeeb   :  { %5466 = vadd.xlane.f32.xlu1 %v5465_v46  ;;  %v5462_v59 = vsel %vm116_vm0, %v5446_v51, 0.0 }
 0xeec   :  { %5463 = vadd.xlane.f32.xlu0 %v5462_v59 }
 0xf43   :  { %v5455_v53 = vpop.xlane.xlu1 %5454 }
 0xf44   :  { %v5469_v50 = vmul.f32 0.015625, %v5455_v53  ;;  %v5452_v41 = vpop.xlane.xlu0 %5451 }
 0xf45   :  { %v5468_v52 = vmul.f32 0.015625, %v5452_v41 }
 0xf46   :  { %v5475_v57 = vsub.f32 %v5443_v27, %v5469_v50 }
 0xf47   :  { %v5474_v39 = vsub.f32 %v5442_v2, %v5468_v52 }
 0xf48   :  { %v5481_v47 = vmul.f32 %v5475_v57, %v5475_v57 }
 0xf49   :  { %v5480_v29 = vmul.f32 %v5474_v39, %v5474_v39 }
 0xf4a   :  { %v5489_v43 = vsel %vm116_vm0, %v5481_v47, 0.0 }
 0xf4b   :  { %5490 = vadd.xlane.f32.xlu1 %v5489_v43  ;;  %v5486_v56 = vsel %vm116_vm0, %v5480_v29, 0.0 }
 0xf4c   :  { %5487 = vadd.xlane.f32.xlu0 %v5486_v56 }
 0xf4e   :  { %v5461_v60 = vpop.xlane.xlu1 %5460 }
 0xf4f   :  { %v5471_v63 = vmul.f32 0.015625, %v5461_v60  ;;  %v5458_v35 = vpop.xlane.xlu0 %5457 }
 0xf50   :  { %v5470_v32 = vmul.f32 0.015625, %v5458_v35 }
 0xf51   :  { %v5477_v6 = vsub.f32 %v5445_v30, %v5471_v63 }
 0xf52   :  { %v5476_v8 = vsub.f32 %v5444_v4, %v5470_v32 }
 0xf53   :  { %v5483_v44 = vmul.f32 %v5477_v6, %v5477_v6 }
 0xf54   :  { %v5482_v9 = vmul.f32 %v5476_v8, %v5476_v8 }
 0xf55   :  { %v5495_v12 = vsel %vm116_vm0, %v5483_v44, 0.0 }
 0xf56   :  { %5496 = vadd.xlane.f32.xlu1 %v5495_v12  ;;  %v5492_v28 = vsel %vm116_vm0, %v5482_v9, 0.0 }
 0xf57   :  { %5493 = vadd.xlane.f32.xlu0 %v5492_v28 }
 0xf78   :  { %v5467_v13 = vpop.xlane.xlu1 %5466 }
 0xf79   :  { %v5473_v14 = vmul.f32 0.015625, %v5467_v13  ;;  %v5464_v49 = vpop.xlane.xlu0 %5463 }
 0xf7a   :  { %v5472_v11 = vmul.f32 0.015625, %v5464_v49 }
 0xf7b   :  { %v5479_v16 = vsub.f32 %v5447_v38, %v5473_v14 }
 0xf7c   :  { %v5478_v17 = vsub.f32 %v5446_v51, %v5472_v11 }
 0xf7d   :  { %v5485_v54 = vmul.f32 %v5479_v16, %v5479_v16 }
 0xf7e   :  { %v5484_v15 = vmul.f32 %v5478_v17, %v5478_v17 }
 0xf7f   :  { %v5501_v18 = vsel %vm116_vm0, %v5485_v54, 0.0 }
 0xf80   :  { %5502 = vadd.xlane.f32.xlu1 %v5501_v18  ;;  %v5498_v48 = vsel %vm116_vm0, %v5484_v15, 0.0 }
 0xf81   :  { %5499 = vadd.xlane.f32.xlu0 %v5498_v48 }
 0xfd8   :  { %v5491_v19 = vpop.xlane.xlu1 %5490 }
 0xfd9   :  { %v5505_v34 = vmul.f32 0.015625, %v5491_v19  ;;  %v5488_v20 = vpop.xlane.xlu0 %5487 }
 0xfda   :  { %v5504_v21 = vmul.f32 0.015625, %v5488_v20 }
 0xfdb   :  { %v5511_v0 = vadd.f32 1e-05, %v5505_v34 }
 0xfdc   :  { %v5510_v31 = vadd.f32 1e-05, %v5504_v21 }
 0xfdd   :  { %6872 = vrsqrt.f32 %v5511_v0 }
 0xfde   :  { %6874 = vrsqrt.f32 %v5510_v31 }
 0xfe3   :  { %v5497_v24 = vpop.xlane.xlu1 %5496 }
 0xfe4   :  { %v5507_v36 = vmul.f32 0.015625, %v5497_v24  ;;  %v5494_v10 = vpop.xlane.xlu0 %5493 }
 0xfe5   :  { %v5506_v23 = vmul.f32 0.015625, %v5494_v10 }
 0xfe6   :  { %v5513_v55 = vadd.f32 1e-05, %v5507_v36 }
 0xfe7   :  { %v6873_v61 = vpop.eup %6872  ;;  %v5512_v25 = vadd.f32 1e-05, %v5506_v23 }
 0xfe8   :  { %v6875_v27 = vpop.eup %6874  ;;  %v5523_v2 = vmul.f32 %v6873_v61, %v5475_v57  ;;  %6876 = vrsqrt.f32 %v5513_v55 }
 0xfe9   :  { %v5522_v37 = vmul.f32 %v6875_v27, %v5474_v39  ;;  %6878 = vrsqrt.f32 %v5512_v25 }
 0xfea   :  { %v5535_v62 = vmul.f32 %v5819_v58, %v5523_v2 }
 0xfeb   :  { %v5534_v45 = vmul.f32 %v5819_v58, %v5522_v37 }
 0xfec   :  { %v5547_v5 = vadd.f32 %v5820_v22, %v5535_v62 }
 0xfed   :  { %v5546_v26 = vadd.f32 %v5820_v22, %v5534_v45 }
 0xfee   :  { %5553 = vst.msk [vmem:[#allocation2 + $0x8] sm:$0xff] %vm116_vm0, %v5547_v5 }
 0xfef   :  { %5552 = vst.msk [vmem:[#allocation2] sm:$0xff] %vm116_vm0, %v5546_v26 }
 0xff2   :  { %v6877_v30 = vpop.eup %6876 }
 0xff3   :  { %v6879_v4 = vpop.eup %6878  ;;  %v5525_v1 = vmul.f32 %v6877_v30, %v5477_v6 }
 0xff4   :  { %v5524_v3 = vmul.f32 %v6879_v4, %v5476_v8 }
 0xff5   :  { %v5537_v33 = vmul.f32 %v5819_v58, %v5525_v1 }
 0xff6   :  { %v5536_v40 = vmul.f32 %v5819_v58, %v5524_v3 }
 0xff7   :  { %v5549_v7 = vadd.f32 %v5820_v22, %v5537_v33 }
 0xff8   :  { %v5548_v42 = vadd.f32 %v5820_v22, %v5536_v40 }
 0xff9   :  { %5555 = vst.msk [vmem:[#allocation2 + $0x18] sm:$0xff] %vm116_vm0, %v5549_v7 }
 0xffa   :  { %5554 = vst.msk [vmem:[#allocation2 + $0x10] sm:$0xff] %vm116_vm0, %v5548_v42 }
0x100d   :  { %v5503_v38 = vpop.xlane.xlu1 %5502 }
0x100e   :  { %v5509_v51 = vmul.f32 0.015625, %v5503_v38  ;;  %v5500_v46 = vpop.xlane.xlu0 %5499 }
0x100f   :  { %v5508_v59 = vmul.f32 0.015625, %v5500_v46 }
0x1010   :  { %v5515_v53 = vadd.f32 1e-05, %v5509_v51 }
0x1011   :  { %v5514_v50 = vadd.f32 1e-05, %v5508_v59 }
0x1012   :  { %6880 = vrsqrt.f32 %v5515_v53 }
0x1013   :  { %6882 = vrsqrt.f32 %v5514_v50 }
0x101c   :  { %v6881_v41 = vpop.eup %6880 }
0x101d   :  { %v6883_v52 = vpop.eup %6882  ;;  %v5527_v57 = vmul.f32 %v6881_v41, %v5479_v16 }
0x101e   :  { %v5526_v39 = vmul.f32 %v6883_v52, %v5478_v17 }
0x101f   :  { %v5539_v47 = vmul.f32 %v5819_v58, %v5527_v57 }
0x1020   :  { %v5538_v29 = vmul.f32 %v5819_v58, %v5526_v39 }
0x1021   :  { %v5551_v43 = vadd.f32 %v5820_v22, %v5539_v47 }
0x1022   :  { %v5550_v56 = vadd.f32 %v5820_v22, %v5538_v29 }
0x1023   :  { %5557 = vst.msk [vmem:[#allocation2 + $0x28] sm:$0xff] %vm116_vm0, %v5551_v43 }
0x1024   :  { %5556 = vst.msk [vmem:[#allocation2 + $0x20] sm:$0xff] %vm116_vm0, %v5550_v56 }
0x1025   :  { %6901 = shalt.err (!%p6898_p4)
}
0x1026   :  { %s6902_s14 = scalar_lea.hbm %s8237_s13, 768 }
0x1027   :  { %p6903_p5 = scmp.ne.s32.totalorder %s8237_s13, %s6902_s14  ;;  %p6906_p6 = scmp.lt.u32.totalorder %s6902_s14, %s8237_s13 }
0x1029   :  { %p6908_p7 = pnand %p6906_p6, %p6903_p5 }
0x102b   :  { %6911 = shalt.err (!%p6908_p7)
}
0x102c   :  { %s6920_s18 = smov 128   ;;  %s6921_s19 = smov 8  }
0x102d   :  { %5569 = dma.vmem_to_hbm [thread:$0]  %s5564_s12, 768, %s8237_s13, [#allocation3], %s6920_s18, %s6920_s18, %s6921_s19  }
0x102e   :  { %6912 = dma.done.wait [#allocation3], 768  }
0x102f   :  { %6913 = vsyncadd [#allocation3], 4294966528 }
0x1030   :  { %5573 = vsyncpa [#allocation3], 1 }

</bundles_post_ra>
